<compile_context>
chip_gen: v5e
topology: v5e:2x2
jax: 0.10.0
libtpu: 0.0.40
codegen_flags: <defaults>
</compile_context>

<pallas_src>
import math

import jax
import jax.numpy as jnp
from jax import lax
from jax.experimental import pallas as pl
from jax.experimental.pallas import tpu as pltpu


_SQRT_HALF = 1.0 / math.sqrt(2.0)


# ----------------------------------------------------------------------------
# tiling helpers
# ----------------------------------------------------------------------------
def _round_up(n, m):
    return ((n + m - 1) // m) * m


def _vmem_limit_bytes():
    """Generation-aware scoped-VMEM cap (~75% of physical, capped at 100 MiB)."""
    try:
        cap = int(pltpu.get_tpu_info().vmem_capacity_bytes)
    except Exception:                       # noqa: BLE001 - trace-time HW query may differ
        cap = 64 << 20                      # conservative fallback (v7x per-TC size)
    return max(32 << 20, min(cap * 3 // 4, 100 << 20))


def _recurrence_tiling(B, T, E, H, budget_bytes):
    """(padded batch, batch tile, #tiles) for the fused recurrence kernel.

    Uses the full padded batch per grid step when it fits the VMEM budget
    (max MXU fill, single grid step on v5e/v6e); otherwise multiple-of-16
    tiles so several tiles exist and the "parallel" grid axis can shard
    across v7x's two TensorCores."""
    Bp = _round_up(max(B, 16), 16)
    # resident bytes per batch row in the recurrence kernel:
    #   x block  (bf16, double-buffered): 2 * T*E*2
    #   seq block(bf16, double-buffered): 2 * T*H*2
    #   xw scratch (f32):                 T*H*4
    #   ~6 (tb,H) f32 vectors (h, s, ss, cwb, h0, temporaries)
    per_row = T * (4 * E + 8 * H) + 24 * H
    tb_max = max(16, int(budget_bytes * 0.6) // max(per_row, 1))
    if Bp <= tb_max:
        return Bp, Bp, 1
    tb = max(16, (tb_max // 16) * 16)
    Bp = _round_up(Bp, tb)
    return Bp, tb, Bp // tb


def _row_tile(n_rows, cap=2048):
    """Largest row tile <= cap dividing n_rows (multiple of 16, then 8)."""
    if n_rows <= cap:
        return n_rows
    for t in range(cap - cap % 16, 15, -16):
        if n_rows % t == 0:
            return t
    for t in range(cap - cap % 8, 7, -8):
        if n_rows % t == 0:
            return t
    return n_rows


# ----------------------------------------------------------------------------
# (1) fused input projection + ConstrainedRNN recurrence + BatchNorm stats
# ----------------------------------------------------------------------------
def crnn_recurrence(x_tiles, w_ih, cwb_tiles, h0_tiles, w_hh, *,
                    T, batch_tile, n_valid_rows, vmem_limit):
    """h_t = tanh(x_t W_ih + c W_c + b + h_{t-1} W_hh).

    x_tiles     : (nb, T*tb, E) bf16   time-major rows within each batch tile
    cwb_tiles   : (nb, tb, H)  f32     precomputed c @ W_c + b
    h0_tiles    : (nb, tb, H)  f32
    returns seq (nb, T*tb, H) bf16, per-row BN sum / sum-of-squares (f32)."""
    nb, TR, E = x_tiles.shape
    tb = batch_tile
    H = w_hh.shape[0]
    unroll = True if T <= 16 else 2

    def kernel(x_ref, wih_ref, cwb_ref, h0_ref, whh_ref,
               seq_ref, s_ref, ss_ref, xw_ref):
        # fused input projection: ONE big MXU matmul, f32 result kept in VMEM
        xw_ref[...] = jnp.dot(x_ref[...], wih_ref[...],
                              preferred_element_type=jnp.float32)
        cwb = cwb_ref[...]                                   # (tb, H) f32
        whh = whh_ref[...]                                   # (H, H) bf16
        # mask padded batch rows out of the BatchNorm statistics
        row = (lax.broadcasted_iota(jnp.int32, (tb, 1), 0)
               + pl.program_id(0) * tb)
        valid = (row < n_valid_rows).astype(jnp.float32)     # (tb, 1)
        s_ref[...] = jnp.zeros_like(s_ref)
        ss_ref[...] = jnp.zeros_like(ss_ref)

        # TODO(synk): hold W_hh in MXU weight registers across the loop via
        # pltpu.matmul_push_rhs / matmul_acc_lhs / matmul_pop.
        def step(t, h):
            off = pl.multiple_of(t * tb, tb)
            pre = xw_ref[pl.ds(off, tb), :] + cwb
            h_new = jnp.tanh(
                pre + jnp.dot(h.astype(jnp.bfloat16), whh,
                              preferred_element_type=jnp.float32))
            seq_ref[pl.ds(off, tb), :] = h_new.astype(seq_ref.dtype)
            hv = h_new * valid
            s_ref[...] += hv
            ss_ref[...] += hv * h_new
            return h_new

        lax.fori_loop(0, T, step, h0_ref[...], unroll=unroll)

    return pl.pallas_call(
        kernel,
        out_shape=(jax.ShapeDtypeStruct((nb, TR, H), jnp.bfloat16),
                   jax.ShapeDtypeStruct((nb, tb, H), jnp.float32),
                   jax.ShapeDtypeStruct((nb, tb, H), jnp.float32)),
        grid=(nb,),
        in_specs=[
            pl.BlockSpec((None, TR, E), lambda i: (i, 0, 0)),   # x
            pl.BlockSpec((E, H), lambda i: (0, 0)),             # W_ih
            pl.BlockSpec((None, tb, H), lambda i: (i, 0, 0)),   # cwb
            pl.BlockSpec((None, tb, H), lambda i: (i, 0, 0)),   # h0
            pl.BlockSpec((H, H), lambda i: (0, 0)),             # W_hh
        ],
        out_specs=(
            pl.BlockSpec((None, TR, H), lambda i: (i, 0, 0)),   # seq (bf16)
            pl.BlockSpec((None, tb, H), lambda i: (i, 0, 0)),   # BN row sums
            pl.BlockSpec((None, tb, H), lambda i: (i, 0, 0)),   # BN row sum-of-squares
        ),
        scratch_shapes=[pltpu.VMEM((TR, H), jnp.float32)],      # xW scratch (f32)
        compiler_params=pltpu.CompilerParams(
            dimension_semantics=("parallel",),
            vmem_limit_bytes=vmem_limit),
    )(x_tiles, w_ih, cwb_tiles, h0_tiles, w_hh)


# ----------------------------------------------------------------------------
# (2) head: BatchNorm -> Linear(pad 128) -> exact GELU -> fused padded heads
# ----------------------------------------------------------------------------
def _head_kernel(seq_ref, mean_ref, istd_ref, wlin_ref, blin_ref,
                 whead_ref, bhead_ref, out_ref, head_ref):
    x = seq_ref[...].astype(jnp.float32)
    xn = (x - mean_ref[...]) * istd_ref[...]                     # BN (f32)
    y = jnp.dot(xn.astype(jnp.bfloat16), wlin_ref[...],
                preferred_element_type=jnp.float32) + blin_ref[...]
    g = 0.5 * y * (1.0 + lax.erf(y * _SQRT_HALF))                # exact GELU (f32)
    out_ref[...] = g.astype(out_ref.dtype)
    head_ref[...] = (jnp.dot(g.astype(jnp.bfloat16), whead_ref[...],
                             preferred_element_type=jnp.float32)
                     + bhead_ref[...]).astype(head_ref.dtype)


def head(seq_flat, mean, inv_std, w_lin_p, b_lin_p, w_head_p, b_head_p, *,
         vmem_limit):
    n_rows, H = seq_flat.shape
    width_lin = w_lin_p.shape[1]
    width_head = w_head_p.shape[1]
    tn = _row_tile(n_rows)
    return pl.pallas_call(
        _head_kernel,
        out_shape=(jax.ShapeDtypeStruct((n_rows, width_lin), jnp.bfloat16),
                   jax.ShapeDtypeStruct((n_rows, width_head), jnp.bfloat16)),
        grid=(n_rows // tn,),
        in_specs=[
            pl.BlockSpec((tn, H), lambda i: (i, 0)),
            pl.BlockSpec((1, H), lambda i: (0, 0)),
            pl.BlockSpec((1, H), lambda i: (0, 0)),
            pl.BlockSpec((H, width_lin), lambda i: (0, 0)),
            pl.BlockSpec((1, width_lin), lambda i: (0, 0)),
            pl.BlockSpec((width_lin, width_head), lambda i: (0, 0)),
            pl.BlockSpec((1, width_head), lambda i: (0, 0)),
        ],
        out_specs=(
            pl.BlockSpec((tn, width_lin), lambda i: (i, 0)),
            pl.BlockSpec((tn, width_head), lambda i: (i, 0)),
        ),
        compiler_params=pltpu.CompilerParams(
            dimension_semantics=("parallel",),
            vmem_limit_bytes=vmem_limit),
    )(seq_flat, mean, inv_std, w_lin_p, b_lin_p, w_head_p, b_head_p)


# ----------------------------------------------------------------------------
# parameters (deterministic, xavier_normal for >1-D weights, zero biases)
# ----------------------------------------------------------------------------
def xavier_normal(key, shape):
    std = math.sqrt(2.0 / (shape[0] + shape[1]))
    return std * jax.random.normal(key, shape, dtype=jnp.float32)


def make_params(key, vocab_sizes, n_continuous, n_constraints, E, H):
    keys = iter(jax.random.split(key, 16))
    p = {}
    p["emb"] = [xavier_normal(next(keys), (v, E)) for v in vocab_sizes]
    p["w_cont"] = xavier_normal(next(keys), (n_continuous, E))
    p["b_cont"] = jnp.zeros((E,), jnp.float32)
    p["w_ih"] = xavier_normal(next(keys), (E, H))
    p["w_hh"] = xavier_normal(next(keys), (H, H))
    p["w_c"] = xavier_normal(next(keys), (n_constraints, H))
    p["b_rnn"] = jnp.zeros((1, H), jnp.float32)
    p["w_lin"] = xavier_normal(next(keys), (H, H // 2))
    p["b_lin"] = jnp.zeros((1, H // 2), jnp.float32)
    wcls = [xavier_normal(next(keys), (H // 2, v)) for v in vocab_sizes]
    p["w_cls"] = jnp.concatenate(wcls, axis=1)
    p["b_cls"] = jnp.zeros((1, sum(vocab_sizes)), jnp.float32)
    p["w_reg"] = xavier_normal(next(keys), (H // 2, n_continuous))
    p["b_reg"] = jnp.zeros((1, n_continuous), jnp.float32)
    return p


# ----------------------------------------------------------------------------
# Cosmo forward (gathers / plumbing in XLA, hot path in Pallas)
# ----------------------------------------------------------------------------
def cosmo_forward(params, x_cat, x_cont, constraints, hidden_size):
    B, T, _ = x_cat.shape
    H = hidden_size
    E = params["w_ih"].shape[0]
    half = H // 2
    n_cls = params["w_cls"].shape[1]
    n_reg = params["w_reg"].shape[1]
    n_out = n_cls + n_reg
    vmem_limit = _vmem_limit_bytes()

    # InLayer: embedding lookups + continuous projection (XLA gathers)
    emb = params["b_cont"][None, None, :]
    for i, tbl in enumerate(params["emb"]):
        emb = emb + tbl[x_cat[..., i]]
    emb = emb + jnp.einsum("btc,ce->bte", x_cont, params["w_cont"])
    # TODO(synk): honour variable lengths the way bb.ConstrainedRNN does.

    # batch padding / tiling for the fused recurrence (VMEM-budgeted tile)
    Bp, tb, nb = _recurrence_tiling(B, T, E, H, vmem_limit)

    emb_p = jnp.pad(emb.astype(jnp.float32), ((0, Bp - B), (0, 0), (0, 0)))
    # (Bp,T,E) -> (nb, tb, T, E) -> (nb, T, tb, E) -> (nb, T*tb, E)
    x_tiles = (emb_p.reshape(nb, tb, T, E).transpose(0, 2, 1, 3)
               .reshape(nb, T * tb, E).astype(jnp.bfloat16))

    # precompute cwb = constraints @ W_c + b in XLA (tiny K=3 matmul)
    c_pad = jnp.pad(constraints.astype(jnp.float32), ((0, Bp - B), (0, 0)))
    cwb = (c_pad @ params["w_c"] + params["b_rnn"]).reshape(nb, tb, H)
    h0 = jnp.zeros((nb, tb, H), jnp.float32)

    # (1) fused projection + recurrence + BatchNorm statistics
    seq, row_sum, row_sumsq = crnn_recurrence(
        x_tiles, params["w_ih"].astype(jnp.bfloat16), cwb, h0,
        params["w_hh"].astype(jnp.bfloat16),
        T=T, batch_tile=tb, n_valid_rows=B, vmem_limit=vmem_limit)

    cnt = float(B * T)
    mean = (jnp.sum(row_sum, axis=(0, 1)) / cnt)[None, :]              # (1, H)
    ex2 = (jnp.sum(row_sumsq, axis=(0, 1)) / cnt)[None, :]
    var = jnp.maximum(ex2 - mean * mean, 0.0)                          # biased var (torch BN)
    inv_std = lax.rsqrt(var + 1e-5)

    # (2) head with lane-padded (128-wide) fused weights
    half_p = _round_up(half, 128)
    out_p = _round_up(n_out, 128)
    bf = jnp.bfloat16
    w_lin_p = jnp.zeros((H, half_p), bf).at[:, :half].set(params["w_lin"].astype(bf))
    b_lin_p = jnp.zeros((1, half_p), jnp.float32).at[:, :half].set(params["b_lin"])
    w_head = jnp.concatenate([params["w_cls"], params["w_reg"]], axis=1)
    w_head_p = jnp.zeros((half_p, out_p), bf).at[:half, :n_out].set(w_head.astype(bf))
    b_head = jnp.concatenate([params["b_cls"], params["b_reg"]], axis=1)
    b_head_p = jnp.zeros((1, out_p), jnp.float32).at[:, :n_out].set(b_head)

    seq_flat = seq.reshape(nb * T * tb, H)
    gelu_out, head_out = head(seq_flat, mean, inv_std,
                              w_lin_p, b_lin_p, w_head_p, b_head_p,
                              vmem_limit=vmem_limit)

    def unflatten(a):                 # (nb*T*tb, F) -> (B, T, F), drop padding
        f = a.shape[-1]
        return (a.reshape(nb, T, tb, f).transpose(0, 2, 1, 3)
                .reshape(Bp, T, f)[:B].astype(jnp.float32))

    cat_out = unflatten(head_out[:, :n_cls])
    time_out = unflatten(head_out[:, n_cls:n_out]) if n_reg > 0 else None
    out = unflatten(gelu_out[:, :half])
    return cat_out, time_out, out


# ----------------------------------------------------------------------------
# pure-JAX float32 reference (same math, no Pallas, no bf16) for validation
# ----------------------------------------------------------------------------
def cosmo_reference(params, x_cat, x_cont, constraints, hidden_size):
    B, T, _ = x_cat.shape
    H = hidden_size
    emb = params["b_cont"][None, None, :]
    for i, tbl in enumerate(params["emb"]):
        emb = emb + tbl[x_cat[..., i]]
    emb = emb + jnp.einsum("btc,ce->bte", x_cont, params["w_cont"])
    x = jnp.transpose(emb, (1, 0, 2))                                  # (T, B, E)
    cw = constraints @ params["w_c"] + params["b_rnn"]                 # (B, H)

    def step(h, x_t):
        h_new = jnp.tanh(x_t @ params["w_ih"] + h @ params["w_hh"] + cw)
        return h_new, h_new

    _, seq = lax.scan(step, jnp.zeros((B, H), jnp.float32), x)         # (T, B, H)
    flat = seq.reshape(T * B, H)
    mean = jnp.mean(flat, axis=0, keepdims=True)
    var = jnp.mean((flat - mean) ** 2, axis=0, keepdims=True)
    xn = (flat - mean) * lax.rsqrt(var + 1e-5)
    y = xn @ params["w_lin"] + params["b_lin"]
    g = 0.5 * y * (1.0 + lax.erf(y * _SQRT_HALF))
    cat = g @ params["w_cls"] + params["b_cls"]
    reg = g @ params["w_reg"] + params["b_reg"]

    def back(a):
        return jnp.transpose(a.reshape(T, B, a.shape[-1]), (1, 0, 2))
    return back(cat), back(reg), back(g)


# ----------------------------------------------------------------------------
if __name__ == "__main__":
    vocabs = {"activity": 6, "resource": 5}
    vocab_sizes = list(vocabs.values())
    n_continuous = 2
    n_constraints = 3
    embedding_size = 32
    hidden_size = 128
    B, T = 2, 8

    key = jax.random.PRNGKey(0)
    k_par, k_cat0, k_cat1, k_cont, k_con = jax.random.split(key, 5)
    params = make_params(k_par, vocab_sizes, n_continuous, n_constraints,
                         embedding_size, hidden_size)

    x_cat = jnp.stack(
        [jax.random.randint(k_cat0, (B, T), 0, vocab_sizes[0]),
         jax.random.randint(k_cat1, (B, T), 0, vocab_sizes[1])], axis=-1
    ).astype(jnp.int32)                                    # (B, T, n_vocabs)
    x_cont = jax.random.normal(k_cont, (B, T, n_continuous), jnp.float32)
    constraints = jax.random.normal(k_con, (B, n_constraints), jnp.float32)

    fwd = jax.jit(lambda xc, xr, c: cosmo_forward(params, xc, xr, c, hidden_size))
    cat_out, time_out, out = fwd(x_cat, x_cont, constraints)
    jax.block_until_ready((cat_out, time_out, out))

    assert cat_out.shape == (B, T, sum(vocab_sizes))
    assert time_out.shape == (B, T, n_continuous)
    assert out.shape == (B, T, hidden_size // 2)
    assert bool(jnp.all(jnp.isfinite(cat_out)))

    # numerics vs pure-JAX f32 reference (loose: bf16 MXU operands / bf16 seq)
    ref_cat, ref_time, ref_out = jax.jit(
        lambda xc, xr, c: cosmo_reference(params, xc, xr, c, hidden_size)
    )(x_cat, x_cont, constraints)
    for got, want in ((cat_out, ref_cat), (time_out, ref_time), (out, ref_out)):
        err = float(jnp.max(jnp.abs(got - want)))
        assert err < 0.2, f"max abs err too large: {err}"

    print("KERNEL_OK")
</pallas_src>

<mosaic_0001>
module attributes {stable_mosaic.version = 11 : i64} {
  func.func @kernel(%arg0: i32, %arg1: memref<1x128x32xbf16, #tpu.memory_space<vmem>>, %arg2: memref<32x128xbf16, #tpu.memory_space<vmem>>, %arg3: memref<1x16x128xf32, #tpu.memory_space<vmem>>, %arg4: memref<1x16x128xf32, #tpu.memory_space<vmem>>, %arg5: memref<128x128xbf16, #tpu.memory_space<vmem>>, %arg6: memref<1x128x128xbf16, #tpu.memory_space<vmem>>, %arg7: memref<1x16x128xf32, #tpu.memory_space<vmem>>, %arg8: memref<1x16x128xf32, #tpu.memory_space<vmem>>, %arg9: memref<128x128xf32, #tpu.memory_space<vmem>>) attributes {dimension_semantics = [#tpu.dimension_semantics<parallel>], iteration_bounds = array<i64: 1>, scalar_prefetch = 0 : i64, scratch_operands = 1 : i64, tpu.core_type = #tpu.core_type<tc>, window_params = [{transform_indices = @transform_0, window_bounds = array<i64: 1, 128, 32>}, {pipeline_mode = #tpu.pipeline_mode<synchronous>, transform_indices = @transform_1, window_bounds = array<i64: 32, 128>}, {transform_indices = @transform_2, window_bounds = array<i64: 1, 16, 128>}, {transform_indices = @transform_3, window_bounds = array<i64: 1, 16, 128>}, {pipeline_mode = #tpu.pipeline_mode<synchronous>, transform_indices = @transform_4, window_bounds = array<i64: 128, 128>}, {transform_indices = @transform_5, window_bounds = array<i64: 1, 128, 128>}, {transform_indices = @transform_6, window_bounds = array<i64: 1, 16, 128>}, {transform_indices = @transform_7, window_bounds = array<i64: 1, 16, 128>}]} {
    %c0 = arith.constant 0 : index
    %c0_0 = arith.constant 0 : index
    %c0_1 = arith.constant 0 : index
    %0 = vector.load %arg1[%c0, %c0_0, %c0_1] : memref<1x128x32xbf16, #tpu.memory_space<vmem>>, vector<1x128x32xbf16>
    %1 = vector.shape_cast %0 : vector<1x128x32xbf16> to vector<128x32xbf16>
    %c0_2 = arith.constant 0 : index
    %c0_3 = arith.constant 0 : index
    %2 = vector.load %arg2[%c0_2, %c0_3] : memref<32x128xbf16, #tpu.memory_space<vmem>>, vector<32x128xbf16>
    %cst = arith.constant dense<0.000000e+00> : vector<128x128xf32>
    %3 = tpu.matmul %1, %2, %cst {dimension_numbers = #tpu.dot_dimension_numbers<[1], [0], [0], [1], [0, 0, 1, 1], [], []>} : vector<128x32xbf16>, vector<32x128xbf16>, vector<128x128xf32> -> vector<128x128xf32>
    %c0_4 = arith.constant 0 : index
    %c0_5 = arith.constant 0 : index
    %4 = vector.load %arg9[%c0_4, %c0_5] : memref<128x128xf32, #tpu.memory_space<vmem>>, vector<128x128xf32>
    tpu.vector_store %arg9[%c0_4, %c0_5], %3 {strides = array<i32>} : memref<128x128xf32, #tpu.memory_space<vmem>>, vector<128x128xf32>,
    %c0_6 = arith.constant 0 : index
    %c0_7 = arith.constant 0 : index
    %c0_8 = arith.constant 0 : index
    %5 = vector.load %arg3[%c0_6, %c0_7, %c0_8] : memref<1x16x128xf32, #tpu.memory_space<vmem>>, vector<1x16x128xf32>
    %6 = vector.shape_cast %5 : vector<1x16x128xf32> to vector<16x128xf32>
    %c0_9 = arith.constant 0 : index
    %c0_10 = arith.constant 0 : index
    %7 = vector.load %arg5[%c0_9, %c0_10] : memref<128x128xbf16, #tpu.memory_space<vmem>>, vector<128x128xbf16>
    %8 = tpu.iota {dimensions = array<i32: 0>} : vector<16x1xi32>
    %c16_i32 = arith.constant 16 : i32
    %9 = arith.muli %arg0, %c16_i32 : i32
    %10 = vector.broadcast %9 : i32 to vector<16x1xi32>
    %11 = arith.addi %8, %10 : vector<16x1xi32>
    %c2_i32 = arith.constant 2 : i32
    %12 = vector.broadcast %c2_i32 : i32 to vector<16x1xi32>
    %13 = arith.cmpi slt, %11, %12 : vector<16x1xi32>
    %14 = arith.extui %13 : vector<16x1xi1> to vector<16x1xi32>
    %15 = arith.sitofp %14 : vector<16x1xi32> to vector<16x1xf32>
    %cst_11 = arith.constant 0.000000e+00 : f32
    %16 = vector.broadcast %cst_11 : f32 to vector<16x128xf32>
    %c0_12 = arith.constant 0 : index
    %c0_13 = arith.constant 0 : index
    %c0_14 = arith.constant 0 : index
    %17 = vector.load %arg7[%c0_12, %c0_13, %c0_14] : memref<1x16x128xf32, #tpu.memory_space<vmem>>, vector<1x16x128xf32>
    %18 = vector.shape_cast %17 : vector<1x16x128xf32> to vector<16x128xf32>
    %19 = vector.shape_cast %16 : vector<16x128xf32> to vector<1x16x128xf32>
    tpu.vector_store %arg7[%c0_12, %c0_13, %c0_14], %19 {strides = array<i32>} : memref<1x16x128xf32, #tpu.memory_space<vmem>>, vector<1x16x128xf32>,
    %cst_15 = arith.constant 0.000000e+00 : f32
    %20 = vector.broadcast %cst_15 : f32 to vector<16x128xf32>
    %c0_16 = arith.constant 0 : index
    %c0_17 = arith.constant 0 : index
    %c0_18 = arith.constant 0 : index
    %21 = vector.load %arg8[%c0_16, %c0_17, %c0_18] : memref<1x16x128xf32, #tpu.memory_space<vmem>>, vector<1x16x128xf32>
    %22 = vector.shape_cast %21 : vector<1x16x128xf32> to vector<16x128xf32>
    %23 = vector.shape_cast %20 : vector<16x128xf32> to vector<1x16x128xf32>
    tpu.vector_store %arg8[%c0_16, %c0_17, %c0_18], %23 {strides = array<i32>} : memref<1x16x128xf32, #tpu.memory_space<vmem>>, vector<1x16x128xf32>,
    %c0_19 = arith.constant 0 : index
    %c0_20 = arith.constant 0 : index
    %c0_21 = arith.constant 0 : index
    %24 = vector.load %arg4[%c0_19, %c0_20, %c0_21] : memref<1x16x128xf32, #tpu.memory_space<vmem>>, vector<1x16x128xf32>
    %25 = vector.shape_cast %24 : vector<1x16x128xf32> to vector<16x128xf32>
    %c0_i32 = arith.constant 0 : i32
    %c16_i32_22 = arith.constant 16 : i32
    %26 = arith.muli %c0_i32, %c16_i32_22 : i32
    %27 = tpu.assume_multiple %26, 16 : i32
    %28 = arith.index_cast %27 : i32 to index
    %c0_23 = arith.constant 0 : index
    %29 = vector.load %arg9[%28, %c0_23] : memref<128x128xf32, #tpu.memory_space<vmem>>, vector<16x128xf32>
    %30 = arith.addf %29, %6 : vector<16x128xf32>
    %31 = arith.truncf %25 : vector<16x128xf32> to vector<16x128xbf16>
    %cst_24 = arith.constant dense<0.000000e+00> : vector<16x128xf32>
    %32 = tpu.matmul %31, %7, %cst_24 {dimension_numbers = #tpu.dot_dimension_numbers<[1], [0], [0], [1], [0, 0, 1, 1], [], []>} : vector<16x128xbf16>, vector<128x128xbf16>, vector<16x128xf32> -> vector<16x128xf32>
    %33 = arith.addf %30, %32 : vector<16x128xf32>
    %34 = math.tanh %33 : vector<16x128xf32>
    %35 = arith.truncf %34 : vector<16x128xf32> to vector<16x128xbf16>
    %c0_25 = arith.constant 0 : index
    %36 = arith.index_cast %27 : i32 to index
    %c0_26 = arith.constant 0 : index
    %37 = vector.load %arg6[%c0_25, %36, %c0_26] : memref<1x128x128xbf16, #tpu.memory_space<vmem>>, vector<1x16x128xbf16>
    %38 = vector.shape_cast %37 : vector<1x16x128xbf16> to vector<16x128xbf16>
    %39 = vector.shape_cast %35 : vector<16x128xbf16> to vector<1x16x128xbf16>
    tpu.vector_store %arg6[%c0_25, %36, %c0_26], %39 {strides = array<i32>} : memref<1x128x128xbf16, #tpu.memory_space<vmem>>, vector<1x16x128xbf16>,
    %40 = vector.broadcast %15 : vector<16x1xf32> to vector<16x128xf32>
    %41 = arith.mulf %34, %40 : vector<16x128xf32>
    %c0_27 = arith.constant 0 : index
    %c0_28 = arith.constant 0 : index
    %c0_29 = arith.constant 0 : index
    %42 = vector.load %arg7[%c0_27, %c0_28, %c0_29] : memref<1x16x128xf32, #tpu.memory_space<vmem>>, vector<1x16x128xf32>
    %43 = vector.shape_cast %42 : vector<1x16x128xf32> to vector<16x128xf32>
    %44 = arith.addf %43, %41 : vector<16x128xf32>
    %c0_30 = arith.constant 0 : index
    %c0_31 = arith.constant 0 : index
    %c0_32 = arith.constant 0 : index
    %45 = vector.load %arg7[%c0_30, %c0_31, %c0_32] : memref<1x16x128xf32, #tpu.memory_space<vmem>>, vector<1x16x128xf32>
    %46 = vector.shape_cast %45 : vector<1x16x128xf32> to vector<16x128xf32>
    %47 = vector.shape_cast %44 : vector<16x128xf32> to vector<1x16x128xf32>
    tpu.vector_store %arg7[%c0_30, %c0_31, %c0_32], %47 {strides = array<i32>} : memref<1x16x128xf32, #tpu.memory_space<vmem>>, vector<1x16x128xf32>,
    %c0_33 = arith.constant 0 : index
    %c0_34 = arith.constant 0 : index
    %c0_35 = arith.constant 0 : index
    %48 = vector.load %arg8[%c0_33, %c0_34, %c0_35] : memref<1x16x128xf32, #tpu.memory_space<vmem>>, vector<1x16x128xf32>
    %49 = vector.shape_cast %48 : vector<1x16x128xf32> to vector<16x128xf32>
    %50 = arith.mulf %41, %34 : vector<16x128xf32>
    %51 = arith.addf %49, %50 : vector<16x128xf32>
    %c0_36 = arith.constant 0 : index
    %c0_37 = arith.constant 0 : index
    %c0_38 = arith.constant 0 : index
    %52 = vector.load %arg8[%c0_36, %c0_37, %c0_38] : memref<1x16x128xf32, #tpu.memory_space<vmem>>, vector<1x16x128xf32>
    %53 = vector.shape_cast %52 : vector<1x16x128xf32> to vector<16x128xf32>
    %54 = vector.shape_cast %51 : vector<16x128xf32> to vector<1x16x128xf32>
    tpu.vector_store %arg8[%c0_36, %c0_37, %c0_38], %54 {strides = array<i32>} : memref<1x16x128xf32, #tpu.memory_space<vmem>>, vector<1x16x128xf32>,
    %c1_i32 = arith.constant 1 : i32
    %c16_i32_39 = arith.constant 16 : i32
    %55 = arith.muli %c1_i32, %c16_i32_39 : i32
    %56 = tpu.assume_multiple %55, 16 : i32
    %57 = arith.index_cast %56 : i32 to index
    %c0_40 = arith.constant 0 : index
    %58 = vector.load %arg9[%57, %c0_40] : memref<128x128xf32, #tpu.memory_space<vmem>>, vector<16x128xf32>
    %59 = arith.addf %58, %6 : vector<16x128xf32>
    %60 = arith.truncf %34 : vector<16x128xf32> to vector<16x128xbf16>
    %cst_41 = arith.constant dense<0.000000e+00> : vector<16x128xf32>
    %61 = tpu.matmul %60, %7, %cst_41 {dimension_numbers = #tpu.dot_dimension_numbers<[1], [0], [0], [1], [0, 0, 1, 1], [], []>} : vector<16x128xbf16>, vector<128x128xbf16>, vector<16x128xf32> -> vector<16x128xf32>
    %62 = arith.addf %59, %61 : vector<16x128xf32>
    %63 = math.tanh %62 : vector<16x128xf32>
    %64 = arith.truncf %63 : vector<16x128xf32> to vector<16x128xbf16>
    %c0_42 = arith.constant 0 : index
    %65 = arith.index_cast %56 : i32 to index
    %c0_43 = arith.constant 0 : index
    %66 = vector.load %arg6[%c0_42, %65, %c0_43] : memref<1x128x128xbf16, #tpu.memory_space<vmem>>, vector<1x16x128xbf16>
    %67 = vector.shape_cast %66 : vector<1x16x128xbf16> to vector<16x128xbf16>
    %68 = vector.shape_cast %64 : vector<16x128xbf16> to vector<1x16x128xbf16>
    tpu.vector_store %arg6[%c0_42, %65, %c0_43], %68 {strides = array<i32>} : memref<1x128x128xbf16, #tpu.memory_space<vmem>>, vector<1x16x128xbf16>,
    %69 = vector.broadcast %15 : vector<16x1xf32> to vector<16x128xf32>
    %70 = arith.mulf %63, %69 : vector<16x128xf32>
    %c0_44 = arith.constant 0 : index
    %c0_45 = arith.constant 0 : index
    %c0_46 = arith.constant 0 : index
    %71 = vector.load %arg7[%c0_44, %c0_45, %c0_46] : memref<1x16x128xf32, #tpu.memory_space<vmem>>, vector<1x16x128xf32>
    %72 = vector.shape_cast %71 : vector<1x16x128xf32> to vector<16x128xf32>
    %73 = arith.addf %72, %70 : vector<16x128xf32>
    %c0_47 = arith.constant 0 : index
    %c0_48 = arith.constant 0 : index
    %c0_49 = arith.constant 0 : index
    %74 = vector.load %arg7[%c0_47, %c0_48, %c0_49] : memref<1x16x128xf32, #tpu.memory_space<vmem>>, vector<1x16x128xf32>
    %75 = vector.shape_cast %74 : vector<1x16x128xf32> to vector<16x128xf32>
    %76 = vector.shape_cast %73 : vector<16x128xf32> to vector<1x16x128xf32>
    tpu.vector_store %arg7[%c0_47, %c0_48, %c0_49], %76 {strides = array<i32>} : memref<1x16x128xf32, #tpu.memory_space<vmem>>, vector<1x16x128xf32>,
    %c0_50 = arith.constant 0 : index
    %c0_51 = arith.constant 0 : index
    %c0_52 = arith.constant 0 : index
    %77 = vector.load %arg8[%c0_50, %c0_51, %c0_52] : memref<1x16x128xf32, #tpu.memory_space<vmem>>, vector<1x16x128xf32>
    %78 = vector.shape_cast %77 : vector<1x16x128xf32> to vector<16x128xf32>
    %79 = arith.mulf %70, %63 : vector<16x128xf32>
    %80 = arith.addf %78, %79 : vector<16x128xf32>
    %c0_53 = arith.constant 0 : index
    %c0_54 = arith.constant 0 : index
    %c0_55 = arith.constant 0 : index
    %81 = vector.load %arg8[%c0_53, %c0_54, %c0_55] : memref<1x16x128xf32, #tpu.memory_space<vmem>>, vector<1x16x128xf32>
    %82 = vector.shape_cast %81 : vector<1x16x128xf32> to vector<16x128xf32>
    %83 = vector.shape_cast %80 : vector<16x128xf32> to vector<1x16x128xf32>
    tpu.vector_store %arg8[%c0_53, %c0_54, %c0_55], %83 {strides = array<i32>} : memref<1x16x128xf32, #tpu.memory_space<vmem>>, vector<1x16x128xf32>,
    %c2_i32_56 = arith.constant 2 : i32
    %c16_i32_57 = arith.constant 16 : i32
    %84 = arith.muli %c2_i32_56, %c16_i32_57 : i32
    %85 = tpu.assume_multiple %84, 16 : i32
    %86 = arith.index_cast %85 : i32 to index
    %c0_58 = arith.constant 0 : index
    %87 = vector.load %arg9[%86, %c0_58] : memref<128x128xf32, #tpu.memory_space<vmem>>, vector<16x128xf32>
    %88 = arith.addf %87, %6 : vector<16x128xf32>
    %89 = arith.truncf %63 : vector<16x128xf32> to vector<16x128xbf16>
    %cst_59 = arith.constant dense<0.000000e+00> : vector<16x128xf32>
    %90 = tpu.matmul %89, %7, %cst_59 {dimension_numbers = #tpu.dot_dimension_numbers<[1], [0], [0], [1], [0, 0, 1, 1], [], []>} : vector<16x128xbf16>, vector<128x128xbf16>, vector<16x128xf32> -> vector<16x128xf32>
    %91 = arith.addf %88, %90 : vector<16x128xf32>
    %92 = math.tanh %91 : vector<16x128xf32>
    %93 = arith.truncf %92 : vector<16x128xf32> to vector<16x128xbf16>
    %c0_60 = arith.constant 0 : index
    %94 = arith.index_cast %85 : i32 to index
    %c0_61 = arith.constant 0 : index
    %95 = vector.load %arg6[%c0_60, %94, %c0_61] : memref<1x128x128xbf16, #tpu.memory_space<vmem>>, vector<1x16x128xbf16>
    %96 = vector.shape_cast %95 : vector<1x16x128xbf16> to vector<16x128xbf16>
    %97 = vector.shape_cast %93 : vector<16x128xbf16> to vector<1x16x128xbf16>
    tpu.vector_store %arg6[%c0_60, %94, %c0_61], %97 {strides = array<i32>} : memref<1x128x128xbf16, #tpu.memory_space<vmem>>, vector<1x16x128xbf16>,
    %98 = vector.broadcast %15 : vector<16x1xf32> to vector<16x128xf32>
    %99 = arith.mulf %92, %98 : vector<16x128xf32>
    %c0_62 = arith.constant 0 : index
    %c0_63 = arith.constant 0 : index
    %c0_64 = arith.constant 0 : index
    %100 = vector.load %arg7[%c0_62, %c0_63, %c0_64] : memref<1x16x128xf32, #tpu.memory_space<vmem>>, vector<1x16x128xf32>
    %101 = vector.shape_cast %100 : vector<1x16x128xf32> to vector<16x128xf32>
    %102 = arith.addf %101, %99 : vector<16x128xf32>
    %c0_65 = arith.constant 0 : index
    %c0_66 = arith.constant 0 : index
    %c0_67 = arith.constant 0 : index
    %103 = vector.load %arg7[%c0_65, %c0_66, %c0_67] : memref<1x16x128xf32, #tpu.memory_space<vmem>>, vector<1x16x128xf32>
    %104 = vector.shape_cast %103 : vector<1x16x128xf32> to vector<16x128xf32>
    %105 = vector.shape_cast %102 : vector<16x128xf32> to vector<1x16x128xf32>
    tpu.vector_store %arg7[%c0_65, %c0_66, %c0_67], %105 {strides = array<i32>} : memref<1x16x128xf32, #tpu.memory_space<vmem>>, vector<1x16x128xf32>,
    %c0_68 = arith.constant 0 : index
    %c0_69 = arith.constant 0 : index
    %c0_70 = arith.constant 0 : index
    %106 = vector.load %arg8[%c0_68, %c0_69, %c0_70] : memref<1x16x128xf32, #tpu.memory_space<vmem>>, vector<1x16x128xf32>
    %107 = vector.shape_cast %106 : vector<1x16x128xf32> to vector<16x128xf32>
    %108 = arith.mulf %99, %92 : vector<16x128xf32>
    %109 = arith.addf %107, %108 : vector<16x128xf32>
    %c0_71 = arith.constant 0 : index
    %c0_72 = arith.constant 0 : index
    %c0_73 = arith.constant 0 : index
    %110 = vector.load %arg8[%c0_71, %c0_72, %c0_73] : memref<1x16x128xf32, #tpu.memory_space<vmem>>, vector<1x16x128xf32>
    %111 = vector.shape_cast %110 : vector<1x16x128xf32> to vector<16x128xf32>
    %112 = vector.shape_cast %109 : vector<16x128xf32> to vector<1x16x128xf32>
    tpu.vector_store %arg8[%c0_71, %c0_72, %c0_73], %112 {strides = array<i32>} : memref<1x16x128xf32, #tpu.memory_space<vmem>>, vector<1x16x128xf32>,
    %c3_i32 = arith.constant 3 : i32
    %c16_i32_74 = arith.constant 16 : i32
    %113 = arith.muli %c3_i32, %c16_i32_74 : i32
    %114 = tpu.assume_multiple %113, 16 : i32
    %115 = arith.index_cast %114 : i32 to index
    %c0_75 = arith.constant 0 : index
    %116 = vector.load %arg9[%115, %c0_75] : memref<128x128xf32, #tpu.memory_space<vmem>>, vector<16x128xf32>
    %117 = arith.addf %116, %6 : vector<16x128xf32>
    %118 = arith.truncf %92 : vector<16x128xf32> to vector<16x128xbf16>
    %cst_76 = arith.constant dense<0.000000e+00> : vector<16x128xf32>
    %119 = tpu.matmul %118, %7, %cst_76 {dimension_numbers = #tpu.dot_dimension_numbers<[1], [0], [0], [1], [0, 0, 1, 1], [], []>} : vector<16x128xbf16>, vector<128x128xbf16>, vector<16x128xf32> -> vector<16x128xf32>
    %120 = arith.addf %117, %119 : vector<16x128xf32>
    %121 = math.tanh %120 : vector<16x128xf32>
    %122 = arith.truncf %121 : vector<16x128xf32> to vector<16x128xbf16>
    %c0_77 = arith.constant 0 : index
    %123 = arith.index_cast %114 : i32 to index
    %c0_78 = arith.constant 0 : index
    %124 = vector.load %arg6[%c0_77, %123, %c0_78] : memref<1x128x128xbf16, #tpu.memory_space<vmem>>, vector<1x16x128xbf16>
    %125 = vector.shape_cast %124 : vector<1x16x128xbf16> to vector<16x128xbf16>
    %126 = vector.shape_cast %122 : vector<16x128xbf16> to vector<1x16x128xbf16>
    tpu.vector_store %arg6[%c0_77, %123, %c0_78], %126 {strides = array<i32>} : memref<1x128x128xbf16, #tpu.memory_space<vmem>>, vector<1x16x128xbf16>,
    %127 = vector.broadcast %15 : vector<16x1xf32> to vector<16x128xf32>
    %128 = arith.mulf %121, %127 : vector<16x128xf32>
    %c0_79 = arith.constant 0 : index
    %c0_80 = arith.constant 0 : index
    %c0_81 = arith.constant 0 : index
    %129 = vector.load %arg7[%c0_79, %c0_80, %c0_81] : memref<1x16x128xf32, #tpu.memory_space<vmem>>, vector<1x16x128xf32>
    %130 = vector.shape_cast %129 : vector<1x16x128xf32> to vector<16x128xf32>
    %131 = arith.addf %130, %128 : vector<16x128xf32>
    %c0_82 = arith.constant 0 : index
    %c0_83 = arith.constant 0 : index
    %c0_84 = arith.constant 0 : index
    %132 = vector.load %arg7[%c0_82, %c0_83, %c0_84] : memref<1x16x128xf32, #tpu.memory_space<vmem>>, vector<1x16x128xf32>
    %133 = vector.shape_cast %132 : vector<1x16x128xf32> to vector<16x128xf32>
    %134 = vector.shape_cast %131 : vector<16x128xf32> to vector<1x16x128xf32>
    tpu.vector_store %arg7[%c0_82, %c0_83, %c0_84], %134 {strides = array<i32>} : memref<1x16x128xf32, #tpu.memory_space<vmem>>, vector<1x16x128xf32>,
    %c0_85 = arith.constant 0 : index
    %c0_86 = arith.constant 0 : index
    %c0_87 = arith.constant 0 : index
    %135 = vector.load %arg8[%c0_85, %c0_86, %c0_87] : memref<1x16x128xf32, #tpu.memory_space<vmem>>, vector<1x16x128xf32>
    %136 = vector.shape_cast %135 : vector<1x16x128xf32> to vector<16x128xf32>
    %137 = arith.mulf %128, %121 : vector<16x128xf32>
    %138 = arith.addf %136, %137 : vector<16x128xf32>
    %c0_88 = arith.constant 0 : index
    %c0_89 = arith.constant 0 : index
    %c0_90 = arith.constant 0 : index
    %139 = vector.load %arg8[%c0_88, %c0_89, %c0_90] : memref<1x16x128xf32, #tpu.memory_space<vmem>>, vector<1x16x128xf32>
    %140 = vector.shape_cast %139 : vector<1x16x128xf32> to vector<16x128xf32>
    %141 = vector.shape_cast %138 : vector<16x128xf32> to vector<1x16x128xf32>
    tpu.vector_store %arg8[%c0_88, %c0_89, %c0_90], %141 {strides = array<i32>} : memref<1x16x128xf32, #tpu.memory_space<vmem>>, vector<1x16x128xf32>,
    %c4_i32 = arith.constant 4 : i32
    %c16_i32_91 = arith.constant 16 : i32
    %142 = arith.muli %c4_i32, %c16_i32_91 : i32
    %143 = tpu.assume_multiple %142, 16 : i32
    %144 = arith.index_cast %143 : i32 to index
    %c0_92 = arith.constant 0 : index
    %145 = vector.load %arg9[%144, %c0_92] : memref<128x128xf32, #tpu.memory_space<vmem>>, vector<16x128xf32>
    %146 = arith.addf %145, %6 : vector<16x128xf32>
    %147 = arith.truncf %121 : vector<16x128xf32> to vector<16x128xbf16>
    %cst_93 = arith.constant dense<0.000000e+00> : vector<16x128xf32>
    %148 = tpu.matmul %147, %7, %cst_93 {dimension_numbers = #tpu.dot_dimension_numbers<[1], [0], [0], [1], [0, 0, 1, 1], [], []>} : vector<16x128xbf16>, vector<128x128xbf16>, vector<16x128xf32> -> vector<16x128xf32>
    %149 = arith.addf %146, %148 : vector<16x128xf32>
    %150 = math.tanh %149 : vector<16x128xf32>
    %151 = arith.truncf %150 : vector<16x128xf32> to vector<16x128xbf16>
    %c0_94 = arith.constant 0 : index
    %152 = arith.index_cast %143 : i32 to index
    %c0_95 = arith.constant 0 : index
    %153 = vector.load %arg6[%c0_94, %152, %c0_95] : memref<1x128x128xbf16, #tpu.memory_space<vmem>>, vector<1x16x128xbf16>
    %154 = vector.shape_cast %153 : vector<1x16x128xbf16> to vector<16x128xbf16>
    %155 = vector.shape_cast %151 : vector<16x128xbf16> to vector<1x16x128xbf16>
    tpu.vector_store %arg6[%c0_94, %152, %c0_95], %155 {strides = array<i32>} : memref<1x128x128xbf16, #tpu.memory_space<vmem>>, vector<1x16x128xbf16>,
    %156 = vector.broadcast %15 : vector<16x1xf32> to vector<16x128xf32>
    %157 = arith.mulf %150, %156 : vector<16x128xf32>
    %c0_96 = arith.constant 0 : index
    %c0_97 = arith.constant 0 : index
    %c0_98 = arith.constant 0 : index
    %158 = vector.load %arg7[%c0_96, %c0_97, %c0_98] : memref<1x16x128xf32, #tpu.memory_space<vmem>>, vector<1x16x128xf32>
    %159 = vector.shape_cast %158 : vector<1x16x128xf32> to vector<16x128xf32>
    %160 = arith.addf %159, %157 : vector<16x128xf32>
    %c0_99 = arith.constant 0 : index
    %c0_100 = arith.constant 0 : index
    %c0_101 = arith.constant 0 : index
    %161 = vector.load %arg7[%c0_99, %c0_100, %c0_101] : memref<1x16x128xf32, #tpu.memory_space<vmem>>, vector<1x16x128xf32>
    %162 = vector.shape_cast %161 : vector<1x16x128xf32> to vector<16x128xf32>
    %163 = vector.shape_cast %160 : vector<16x128xf32> to vector<1x16x128xf32>
    tpu.vector_store %arg7[%c0_99, %c0_100, %c0_101], %163 {strides = array<i32>} : memref<1x16x128xf32, #tpu.memory_space<vmem>>, vector<1x16x128xf32>,
    %c0_102 = arith.constant 0 : index
    %c0_103 = arith.constant 0 : index
    %c0_104 = arith.constant 0 : index
    %164 = vector.load %arg8[%c0_102, %c0_103, %c0_104] : memref<1x16x128xf32, #tpu.memory_space<vmem>>, vector<1x16x128xf32>
    %165 = vector.shape_cast %164 : vector<1x16x128xf32> to vector<16x128xf32>
    %166 = arith.mulf %157, %150 : vector<16x128xf32>
    %167 = arith.addf %165, %166 : vector<16x128xf32>
    %c0_105 = arith.constant 0 : index
    %c0_106 = arith.constant 0 : index
    %c0_107 = arith.constant 0 : index
    %168 = vector.load %arg8[%c0_105, %c0_106, %c0_107] : memref<1x16x128xf32, #tpu.memory_space<vmem>>, vector<1x16x128xf32>
    %169 = vector.shape_cast %168 : vector<1x16x128xf32> to vector<16x128xf32>
    %170 = vector.shape_cast %167 : vector<16x128xf32> to vector<1x16x128xf32>
    tpu.vector_store %arg8[%c0_105, %c0_106, %c0_107], %170 {strides = array<i32>} : memref<1x16x128xf32, #tpu.memory_space<vmem>>, vector<1x16x128xf32>,
    %c5_i32 = arith.constant 5 : i32
    %c16_i32_108 = arith.constant 16 : i32
    %171 = arith.muli %c5_i32, %c16_i32_108 : i32
    %172 = tpu.assume_multiple %171, 16 : i32
    %173 = arith.index_cast %172 : i32 to index
    %c0_109 = arith.constant 0 : index
    %174 = vector.load %arg9[%173, %c0_109] : memref<128x128xf32, #tpu.memory_space<vmem>>, vector<16x128xf32>
    %175 = arith.addf %174, %6 : vector<16x128xf32>
    %176 = arith.truncf %150 : vector<16x128xf32> to vector<16x128xbf16>
    %cst_110 = arith.constant dense<0.000000e+00> : vector<16x128xf32>
    %177 = tpu.matmul %176, %7, %cst_110 {dimension_numbers = #tpu.dot_dimension_numbers<[1], [0], [0], [1], [0, 0, 1, 1], [], []>} : vector<16x128xbf16>, vector<128x128xbf16>, vector<16x128xf32> -> vector<16x128xf32>
    %178 = arith.addf %175, %177 : vector<16x128xf32>
    %179 = math.tanh %178 : vector<16x128xf32>
    %180 = arith.truncf %179 : vector<16x128xf32> to vector<16x128xbf16>
    %c0_111 = arith.constant 0 : index
    %181 = arith.index_cast %172 : i32 to index
    %c0_112 = arith.constant 0 : index
    %182 = vector.load %arg6[%c0_111, %181, %c0_112] : memref<1x128x128xbf16, #tpu.memory_space<vmem>>, vector<1x16x128xbf16>
    %183 = vector.shape_cast %182 : vector<1x16x128xbf16> to vector<16x128xbf16>
    %184 = vector.shape_cast %180 : vector<16x128xbf16> to vector<1x16x128xbf16>
    tpu.vector_store %arg6[%c0_111, %181, %c0_112], %184 {strides = array<i32>} : memref<1x128x128xbf16, #tpu.memory_space<vmem>>, vector<1x16x128xbf16>,
    %185 = vector.broadcast %15 : vector<16x1xf32> to vector<16x128xf32>
    %186 = arith.mulf %179, %185 : vector<16x128xf32>
    %c0_113 = arith.constant 0 : index
    %c0_114 = arith.constant 0 : index
    %c0_115 = arith.constant 0 : index
    %187 = vector.load %arg7[%c0_113, %c0_114, %c0_115] : memref<1x16x128xf32, #tpu.memory_space<vmem>>, vector<1x16x128xf32>
    %188 = vector.shape_cast %187 : vector<1x16x128xf32> to vector<16x128xf32>
    %189 = arith.addf %188, %186 : vector<16x128xf32>
    %c0_116 = arith.constant 0 : index
    %c0_117 = arith.constant 0 : index
    %c0_118 = arith.constant 0 : index
    %190 = vector.load %arg7[%c0_116, %c0_117, %c0_118] : memref<1x16x128xf32, #tpu.memory_space<vmem>>, vector<1x16x128xf32>
    %191 = vector.shape_cast %190 : vector<1x16x128xf32> to vector<16x128xf32>
    %192 = vector.shape_cast %189 : vector<16x128xf32> to vector<1x16x128xf32>
    tpu.vector_store %arg7[%c0_116, %c0_117, %c0_118], %192 {strides = array<i32>} : memref<1x16x128xf32, #tpu.memory_space<vmem>>, vector<1x16x128xf32>,
    %c0_119 = arith.constant 0 : index
    %c0_120 = arith.constant 0 : index
    %c0_121 = arith.constant 0 : index
    %193 = vector.load %arg8[%c0_119, %c0_120, %c0_121] : memref<1x16x128xf32, #tpu.memory_space<vmem>>, vector<1x16x128xf32>
    %194 = vector.shape_cast %193 : vector<1x16x128xf32> to vector<16x128xf32>
    %195 = arith.mulf %186, %179 : vector<16x128xf32>
    %196 = arith.addf %194, %195 : vector<16x128xf32>
    %c0_122 = arith.constant 0 : index
    %c0_123 = arith.constant 0 : index
    %c0_124 = arith.constant 0 : index
    %197 = vector.load %arg8[%c0_122, %c0_123, %c0_124] : memref<1x16x128xf32, #tpu.memory_space<vmem>>, vector<1x16x128xf32>
    %198 = vector.shape_cast %197 : vector<1x16x128xf32> to vector<16x128xf32>
    %199 = vector.shape_cast %196 : vector<16x128xf32> to vector<1x16x128xf32>
    tpu.vector_store %arg8[%c0_122, %c0_123, %c0_124], %199 {strides = array<i32>} : memref<1x16x128xf32, #tpu.memory_space<vmem>>, vector<1x16x128xf32>,
    %c6_i32 = arith.constant 6 : i32
    %c16_i32_125 = arith.constant 16 : i32
    %200 = arith.muli %c6_i32, %c16_i32_125 : i32
    %201 = tpu.assume_multiple %200, 16 : i32
    %202 = arith.index_cast %201 : i32 to index
    %c0_126 = arith.constant 0 : index
    %203 = vector.load %arg9[%202, %c0_126] : memref<128x128xf32, #tpu.memory_space<vmem>>, vector<16x128xf32>
    %204 = arith.addf %203, %6 : vector<16x128xf32>
    %205 = arith.truncf %179 : vector<16x128xf32> to vector<16x128xbf16>
    %cst_127 = arith.constant dense<0.000000e+00> : vector<16x128xf32>
    %206 = tpu.matmul %205, %7, %cst_127 {dimension_numbers = #tpu.dot_dimension_numbers<[1], [0], [0], [1], [0, 0, 1, 1], [], []>} : vector<16x128xbf16>, vector<128x128xbf16>, vector<16x128xf32> -> vector<16x128xf32>
    %207 = arith.addf %204, %206 : vector<16x128xf32>
    %208 = math.tanh %207 : vector<16x128xf32>
    %209 = arith.truncf %208 : vector<16x128xf32> to vector<16x128xbf16>
    %c0_128 = arith.constant 0 : index
    %210 = arith.index_cast %201 : i32 to index
    %c0_129 = arith.constant 0 : index
    %211 = vector.load %arg6[%c0_128, %210, %c0_129] : memref<1x128x128xbf16, #tpu.memory_space<vmem>>, vector<1x16x128xbf16>
    %212 = vector.shape_cast %211 : vector<1x16x128xbf16> to vector<16x128xbf16>
    %213 = vector.shape_cast %209 : vector<16x128xbf16> to vector<1x16x128xbf16>
    tpu.vector_store %arg6[%c0_128, %210, %c0_129], %213 {strides = array<i32>} : memref<1x128x128xbf16, #tpu.memory_space<vmem>>, vector<1x16x128xbf16>,
    %214 = vector.broadcast %15 : vector<16x1xf32> to vector<16x128xf32>
    %215 = arith.mulf %208, %214 : vector<16x128xf32>
    %c0_130 = arith.constant 0 : index
    %c0_131 = arith.constant 0 : index
    %c0_132 = arith.constant 0 : index
    %216 = vector.load %arg7[%c0_130, %c0_131, %c0_132] : memref<1x16x128xf32, #tpu.memory_space<vmem>>, vector<1x16x128xf32>
    %217 = vector.shape_cast %216 : vector<1x16x128xf32> to vector<16x128xf32>
    %218 = arith.addf %217, %215 : vector<16x128xf32>
    %c0_133 = arith.constant 0 : index
    %c0_134 = arith.constant 0 : index
    %c0_135 = arith.constant 0 : index
    %219 = vector.load %arg7[%c0_133, %c0_134, %c0_135] : memref<1x16x128xf32, #tpu.memory_space<vmem>>, vector<1x16x128xf32>
    %220 = vector.shape_cast %219 : vector<1x16x128xf32> to vector<16x128xf32>
    %221 = vector.shape_cast %218 : vector<16x128xf32> to vector<1x16x128xf32>
    tpu.vector_store %arg7[%c0_133, %c0_134, %c0_135], %221 {strides = array<i32>} : memref<1x16x128xf32, #tpu.memory_space<vmem>>, vector<1x16x128xf32>,
    %c0_136 = arith.constant 0 : index
    %c0_137 = arith.constant 0 : index
    %c0_138 = arith.constant 0 : index
    %222 = vector.load %arg8[%c0_136, %c0_137, %c0_138] : memref<1x16x128xf32, #tpu.memory_space<vmem>>, vector<1x16x128xf32>
    %223 = vector.shape_cast %222 : vector<1x16x128xf32> to vector<16x128xf32>
    %224 = arith.mulf %215, %208 : vector<16x128xf32>
    %225 = arith.addf %223, %224 : vector<16x128xf32>
    %c0_139 = arith.constant 0 : index
    %c0_140 = arith.constant 0 : index
    %c0_141 = arith.constant 0 : index
    %226 = vector.load %arg8[%c0_139, %c0_140, %c0_141] : memref<1x16x128xf32, #tpu.memory_space<vmem>>, vector<1x16x128xf32>
    %227 = vector.shape_cast %226 : vector<1x16x128xf32> to vector<16x128xf32>
    %228 = vector.shape_cast %225 : vector<16x128xf32> to vector<1x16x128xf32>
    tpu.vector_store %arg8[%c0_139, %c0_140, %c0_141], %228 {strides = array<i32>} : memref<1x16x128xf32, #tpu.memory_space<vmem>>, vector<1x16x128xf32>,
    %c7_i32 = arith.constant 7 : i32
    %c16_i32_142 = arith.constant 16 : i32
    %229 = arith.muli %c7_i32, %c16_i32_142 : i32
    %230 = tpu.assume_multiple %229, 16 : i32
    %231 = arith.index_cast %230 : i32 to index
    %c0_143 = arith.constant 0 : index
    %232 = vector.load %arg9[%231, %c0_143] : memref<128x128xf32, #tpu.memory_space<vmem>>, vector<16x128xf32>
    %233 = arith.addf %232, %6 : vector<16x128xf32>
    %234 = arith.truncf %208 : vector<16x128xf32> to vector<16x128xbf16>
    %cst_144 = arith.constant dense<0.000000e+00> : vector<16x128xf32>
    %235 = tpu.matmul %234, %7, %cst_144 {dimension_numbers = #tpu.dot_dimension_numbers<[1], [0], [0], [1], [0, 0, 1, 1], [], []>} : vector<16x128xbf16>, vector<128x128xbf16>, vector<16x128xf32> -> vector<16x128xf32>
    %236 = arith.addf %233, %235 : vector<16x128xf32>
    %237 = math.tanh %236 : vector<16x128xf32>
    %238 = arith.truncf %237 : vector<16x128xf32> to vector<16x128xbf16>
    %c0_145 = arith.constant 0 : index
    %239 = arith.index_cast %230 : i32 to index
    %c0_146 = arith.constant 0 : index
    %240 = vector.load %arg6[%c0_145, %239, %c0_146] : memref<1x128x128xbf16, #tpu.memory_space<vmem>>, vector<1x16x128xbf16>
    %241 = vector.shape_cast %240 : vector<1x16x128xbf16> to vector<16x128xbf16>
    %242 = vector.shape_cast %238 : vector<16x128xbf16> to vector<1x16x128xbf16>
    tpu.vector_store %arg6[%c0_145, %239, %c0_146], %242 {strides = array<i32>} : memref<1x128x128xbf16, #tpu.memory_space<vmem>>, vector<1x16x128xbf16>,
    %243 = vector.broadcast %15 : vector<16x1xf32> to vector<16x128xf32>
    %244 = arith.mulf %237, %243 : vector<16x128xf32>
    %c0_147 = arith.constant 0 : index
    %c0_148 = arith.constant 0 : index
    %c0_149 = arith.constant 0 : index
    %245 = vector.load %arg7[%c0_147, %c0_148, %c0_149] : memref<1x16x128xf32, #tpu.memory_space<vmem>>, vector<1x16x128xf32>
    %246 = vector.shape_cast %245 : vector<1x16x128xf32> to vector<16x128xf32>
    %247 = arith.addf %246, %244 : vector<16x128xf32>
    %c0_150 = arith.constant 0 : index
    %c0_151 = arith.constant 0 : index
    %c0_152 = arith.constant 0 : index
    %248 = vector.load %arg7[%c0_150, %c0_151, %c0_152] : memref<1x16x128xf32, #tpu.memory_space<vmem>>, vector<1x16x128xf32>
    %249 = vector.shape_cast %248 : vector<1x16x128xf32> to vector<16x128xf32>
    %250 = vector.shape_cast %247 : vector<16x128xf32> to vector<1x16x128xf32>
    tpu.vector_store %arg7[%c0_150, %c0_151, %c0_152], %250 {strides = array<i32>} : memref<1x16x128xf32, #tpu.memory_space<vmem>>, vector<1x16x128xf32>,
    %c0_153 = arith.constant 0 : index
    %c0_154 = arith.constant 0 : index
    %c0_155 = arith.constant 0 : index
    %251 = vector.load %arg8[%c0_153, %c0_154, %c0_155] : memref<1x16x128xf32, #tpu.memory_space<vmem>>, vector<1x16x128xf32>
    %252 = vector.shape_cast %251 : vector<1x16x128xf32> to vector<16x128xf32>
    %253 = arith.mulf %244, %237 : vector<16x128xf32>
    %254 = arith.addf %252, %253 : vector<16x128xf32>
    %c0_156 = arith.constant 0 : index
    %c0_157 = arith.constant 0 : index
    %c0_158 = arith.constant 0 : index
    %255 = vector.load %arg8[%c0_156, %c0_157, %c0_158] : memref<1x16x128xf32, #tpu.memory_space<vmem>>, vector<1x16x128xf32>
    %256 = vector.shape_cast %255 : vector<1x16x128xf32> to vector<16x128xf32>
    %257 = vector.shape_cast %254 : vector<16x128xf32> to vector<1x16x128xf32>
    tpu.vector_store %arg8[%c0_156, %c0_157, %c0_158], %257 {strides = array<i32>} : memref<1x16x128xf32, #tpu.memory_space<vmem>>, vector<1x16x128xf32>,
    %c8_i32 = arith.constant 8 : i32
    return
  }
  func.func @transform_0(%arg0: i32) -> (i32, i32, i32) {
    %c0_i32 = arith.constant 0 : i32
    %c0_i32_0 = arith.constant 0 : i32
    %c0_i32_1 = arith.constant 0 : i32
    return %arg0, %c0_i32, %c0_i32_0 : i32, i32, i32
  }
  func.func @transform_1(%arg0: i32) -> (i32, i32) {
    %c0_i32 = arith.constant 0 : i32
    %c0_i32_0 = arith.constant 0 : i32
    %c0_i32_1 = arith.constant 0 : i32
    return %c0_i32, %c0_i32_0 : i32, i32
  }
  func.func @transform_2(%arg0: i32) -> (i32, i32, i32) {
    %c0_i32 = arith.constant 0 : i32
    %c0_i32_0 = arith.constant 0 : i32
    %c0_i32_1 = arith.constant 0 : i32
    return %arg0, %c0_i32, %c0_i32_0 : i32, i32, i32
  }
  func.func @transform_3(%arg0: i32) -> (i32, i32, i32) {
    %c0_i32 = arith.constant 0 : i32
    %c0_i32_0 = arith.constant 0 : i32
    %c0_i32_1 = arith.constant 0 : i32
    return %arg0, %c0_i32, %c0_i32_0 : i32, i32, i32
  }
  func.func @transform_4(%arg0: i32) -> (i32, i32) {
    %c0_i32 = arith.constant 0 : i32
    %c0_i32_0 = arith.constant 0 : i32
    %c0_i32_1 = arith.constant 0 : i32
    return %c0_i32, %c0_i32_0 : i32, i32
  }
  func.func @transform_5(%arg0: i32) -> (i32, i32, i32) {
    %c0_i32 = arith.constant 0 : i32
    %c0_i32_0 = arith.constant 0 : i32
    %c0_i32_1 = arith.constant 0 : i32
    return %arg0, %c0_i32, %c0_i32_0 : i32, i32, i32
  }
  func.func @transform_6(%arg0: i32) -> (i32, i32, i32) {
    %c0_i32 = arith.constant 0 : i32
    %c0_i32_0 = arith.constant 0 : i32
    %c0_i32_1 = arith.constant 0 : i32
    return %arg0, %c0_i32, %c0_i32_0 : i32, i32, i32
  }
  func.func @transform_7(%arg0: i32) -> (i32, i32, i32) {
    %c0_i32 = arith.constant 0 : i32
    %c0_i32_0 = arith.constant 0 : i32
    %c0_i32_1 = arith.constant 0 : i32
    return %arg0, %c0_i32, %c0_i32_0 : i32, i32, i32
  }
}

module attributes {stable_mosaic.version = 11 : i64} {
  func.func @_head_kernel(%arg0: i32, %arg1: memref<128x128xbf16, #tpu.memory_space<vmem>>, %arg2: memref<1x128xf32, #tpu.memory_space<vmem>>, %arg3: memref<1x128xf32, #tpu.memory_space<vmem>>, %arg4: memref<128x128xbf16, #tpu.memory_space<vmem>>, %arg5: memref<1x128xf32, #tpu.memory_space<vmem>>, %arg6: memref<128x128xbf16, #tpu.memory_space<vmem>>, %arg7: memref<1x128xf32, #tpu.memory_space<vmem>>, %arg8: memref<128x128xbf16, #tpu.memory_space<vmem>>, %arg9: memref<128x128xbf16, #tpu.memory_space<vmem>>) attributes {dimension_semantics = [#tpu.dimension_semantics<parallel>], iteration_bounds = array<i64: 1>, scalar_prefetch = 0 : i64, scratch_operands = 0 : i64, tpu.core_type = #tpu.core_type<tc>, window_params = [{transform_indices = @transform_0, window_bounds = array<i64: 128, 128>}, {pipeline_mode = #tpu.pipeline_mode<synchronous>, transform_indices = @transform_1, window_bounds = array<i64: 1, 128>}, {pipeline_mode = #tpu.pipeline_mode<synchronous>, transform_indices = @transform_2, window_bounds = array<i64: 1, 128>}, {pipeline_mode = #tpu.pipeline_mode<synchronous>, transform_indices = @transform_3, window_bounds = array<i64: 128, 128>}, {pipeline_mode = #tpu.pipeline_mode<synchronous>, transform_indices = @transform_4, window_bounds = array<i64: 1, 128>}, {pipeline_mode = #tpu.pipeline_mode<synchronous>, transform_indices = @transform_5, window_bounds = array<i64: 128, 128>}, {pipeline_mode = #tpu.pipeline_mode<synchronous>, transform_indices = @transform_6, window_bounds = array<i64: 1, 128>}, {transform_indices = @transform_7, window_bounds = array<i64: 128, 128>}, {transform_indices = @transform_8, window_bounds = array<i64: 128, 128>}]} {
    %c0 = arith.constant 0 : index
    %c0_0 = arith.constant 0 : index
    %0 = vector.load %arg1[%c0, %c0_0] : memref<128x128xbf16, #tpu.memory_space<vmem>>, vector<128x128xbf16>
    %1 = arith.extf %0 : vector<128x128xbf16> to vector<128x128xf32>
    %c0_1 = arith.constant 0 : index
    %c0_2 = arith.constant 0 : index
    %2 = vector.load %arg2[%c0_1, %c0_2] : memref<1x128xf32, #tpu.memory_space<vmem>>, vector<1x128xf32>
    %3 = vector.broadcast %2 : vector<1x128xf32> to vector<128x128xf32>
    %4 = arith.subf %1, %3 : vector<128x128xf32>
    %c0_3 = arith.constant 0 : index
    %c0_4 = arith.constant 0 : index
    %5 = vector.load %arg3[%c0_3, %c0_4] : memref<1x128xf32, #tpu.memory_space<vmem>>, vector<1x128xf32>
    %6 = vector.broadcast %5 : vector<1x128xf32> to vector<128x128xf32>
    %7 = arith.mulf %4, %6 : vector<128x128xf32>
    %8 = arith.truncf %7 : vector<128x128xf32> to vector<128x128xbf16>
    %c0_5 = arith.constant 0 : index
    %c0_6 = arith.constant 0 : index
    %9 = vector.load %arg4[%c0_5, %c0_6] : memref<128x128xbf16, #tpu.memory_space<vmem>>, vector<128x128xbf16>
    %cst = arith.constant dense<0.000000e+00> : vector<128x128xf32>
    %10 = tpu.matmul %8, %9, %cst {dimension_numbers = #tpu.dot_dimension_numbers<[1], [0], [0], [1], [0, 0, 1, 1], [], []>} : vector<128x128xbf16>, vector<128x128xbf16>, vector<128x128xf32> -> vector<128x128xf32>
    %c0_7 = arith.constant 0 : index
    %c0_8 = arith.constant 0 : index
    %11 = vector.load %arg5[%c0_7, %c0_8] : memref<1x128xf32, #tpu.memory_space<vmem>>, vector<1x128xf32>
    %12 = vector.broadcast %11 : vector<1x128xf32> to vector<128x128xf32>
    %13 = arith.addf %10, %12 : vector<128x128xf32>
    %cst_9 = arith.constant 5.000000e-01 : f32
    %14 = vector.broadcast %cst_9 : f32 to vector<128x128xf32>
    %15 = arith.mulf %14, %13 : vector<128x128xf32>
    %cst_10 = arith.constant 0.707106769 : f32
    %16 = vector.broadcast %cst_10 : f32 to vector<128x128xf32>
    %17 = arith.mulf %13, %16 : vector<128x128xf32>
    %18 = math.erf %17 : vector<128x128xf32>
    %cst_11 = arith.constant 1.000000e+00 : f32
    %19 = vector.broadcast %cst_11 : f32 to vector<128x128xf32>
    %20 = arith.addf %19, %18 : vector<128x128xf32>
    %21 = arith.mulf %15, %20 : vector<128x128xf32>
    %22 = arith.truncf %21 : vector<128x128xf32> to vector<128x128xbf16>
    %c0_12 = arith.constant 0 : index
    %c0_13 = arith.constant 0 : index
    %23 = vector.load %arg8[%c0_12, %c0_13] : memref<128x128xbf16, #tpu.memory_space<vmem>>, vector<128x128xbf16>
    tpu.vector_store %arg8[%c0_12, %c0_13], %22 {strides = array<i32>} : memref<128x128xbf16, #tpu.memory_space<vmem>>, vector<128x128xbf16>,
    %24 = arith.truncf %21 : vector<128x128xf32> to vector<128x128xbf16>
    %c0_14 = arith.constant 0 : index
    %c0_15 = arith.constant 0 : index
    %25 = vector.load %arg6[%c0_14, %c0_15] : memref<128x128xbf16, #tpu.memory_space<vmem>>, vector<128x128xbf16>
    %cst_16 = arith.constant dense<0.000000e+00> : vector<128x128xf32>
    %26 = tpu.matmul %24, %25, %cst_16 {dimension_numbers = #tpu.dot_dimension_numbers<[1], [0], [0], [1], [0, 0, 1, 1], [], []>} : vector<128x128xbf16>, vector<128x128xbf16>, vector<128x128xf32> -> vector<128x128xf32>
    %c0_17 = arith.constant 0 : index
    %c0_18 = arith.constant 0 : index
    %27 = vector.load %arg7[%c0_17, %c0_18] : memref<1x128xf32, #tpu.memory_space<vmem>>, vector<1x128xf32>
    %28 = vector.broadcast %27 : vector<1x128xf32> to vector<128x128xf32>
    %29 = arith.addf %26, %28 : vector<128x128xf32>
    %30 = arith.truncf %29 : vector<128x128xf32> to vector<128x128xbf16>
    %c0_19 = arith.constant 0 : index
    %c0_20 = arith.constant 0 : index
    %31 = vector.load %arg9[%c0_19, %c0_20] : memref<128x128xbf16, #tpu.memory_space<vmem>>, vector<128x128xbf16>
    tpu.vector_store %arg9[%c0_19, %c0_20], %30 {strides = array<i32>} : memref<128x128xbf16, #tpu.memory_space<vmem>>, vector<128x128xbf16>,
    return
  }
  func.func @transform_0(%arg0: i32) -> (i32, i32) {
    %c0_i32 = arith.constant 0 : i32
    %c0_i32_0 = arith.constant 0 : i32
    return %arg0, %c0_i32 : i32, i32
  }
  func.func @transform_1(%arg0: i32) -> (i32, i32) {
    %c0_i32 = arith.constant 0 : i32
    %c0_i32_0 = arith.constant 0 : i32
    %c0_i32_1 = arith.constant 0 : i32
    return %c0_i32, %c0_i32_0 : i32, i32
  }
  func.func @transform_2(%arg0: i32) -> (i32, i32) {
    %c0_i32 = arith.constant 0 : i32
    %c0_i32_0 = arith.constant 0 : i32
    %c0_i32_1 = arith.constant 0 : i32
    return %c0_i32, %c0_i32_0 : i32, i32
  }
  func.func @transform_3(%arg0: i32) -> (i32, i32) {
    %c0_i32 = arith.constant 0 : i32
    %c0_i32_0 = arith.constant 0 : i32
    %c0_i32_1 = arith.constant 0 : i32
    return %c0_i32, %c0_i32_0 : i32, i32
  }
  func.func @transform_4(%arg0: i32) -> (i32, i32) {
    %c0_i32 = arith.constant 0 : i32
    %c0_i32_0 = arith.constant 0 : i32
    %c0_i32_1 = arith.constant 0 : i32
    return %c0_i32, %c0_i32_0 : i32, i32
  }
  func.func @transform_5(%arg0: i32) -> (i32, i32) {
    %c0_i32 = arith.constant 0 : i32
    %c0_i32_0 = arith.constant 0 : i32
    %c0_i32_1 = arith.constant 0 : i32
    return %c0_i32, %c0_i32_0 : i32, i32
  }
  func.func @transform_6(%arg0: i32) -> (i32, i32) {
    %c0_i32 = arith.constant 0 : i32
    %c0_i32_0 = arith.constant 0 : i32
    %c0_i32_1 = arith.constant 0 : i32
    return %c0_i32, %c0_i32_0 : i32, i32
  }
  func.func @transform_7(%arg0: i32) -> (i32, i32) {
    %c0_i32 = arith.constant 0 : i32
    %c0_i32_0 = arith.constant 0 : i32
    return %arg0, %c0_i32 : i32, i32
  }
  func.func @transform_8(%arg0: i32) -> (i32, i32) {
    %c0_i32 = arith.constant 0 : i32
    %c0_i32_0 = arith.constant 0 : i32
    return %arg0, %c0_i32 : i32, i32
  }
}

</mosaic_0001>

<bundles_post_ra>
// kernel: _lambda_.3
= control target key start
LH: loop header
LB: loop body
LE: loop exit
PB: predicated region body
PF: predicated region fallthrough
CT: control target
= control target key end

     0   :  { %s2331_s3 = inlined_call_operand.vmem [shape: bf16[128,128], index: 3, kind: input, shape index: {}]   ;;  %s2332_s1 = inlined_call_operand.vmem [shape: f32[1,128], index: 1, kind: input, shape index: {}]   ;;  %s2333_s2 = inlined_call_operand.vmem [shape: f32[1,128], index: 2, kind: input, shape index: {}]   ;;  %s2334_s4 = inlined_call_operand.vmem [shape: f32[1,128], index: 4, kind: input, shape index: {}, may-alias: {4,6}]   ;;  %s2335_s0 = inlined_call_operand.vmem [shape: bf16[128,128], index: 0, kind: input, shape index: {}]   ;;  %s2336_s5 = inlined_call_operand.vmem [shape: bf16[128,128], index: 5, kind: input, shape index: {}]   ;;  %s2337_s7 = inlined_call_operand.vmem [shape: bf16[128,128], index: 7, kind: output, shape index: {0}]   ;;  %s2338_s6 = inlined_call_operand.vmem [shape: f32[1,128], index: 6, kind: input, shape index: {}, may-alias: {4,6}]   ;;  %s2339_s8 = inlined_call_operand.vmem [shape: bf16[128,128], index: 8, kind: output, shape index: {1}]  }
   0x1   :  { %v1253_v0 = vld [vmem:[%s2331_s3 + $0x38] sm:$0xff]  ;;  %v1252_v1 = vld [vmem:[%s2331_s3 + $0x30] sm:$0xff]  ;;  %v1251_v2 = vld [vmem:[%s2331_s3 + $0x28] sm:$0xff] }
   0x2   :  { %176 = vmatpush.bf16.msra.mxu0 %v1253_v0  ;;  %1395 = vmatpush.bf16.msra.mxu2 %v1253_v0  ;;  %v1250_v3 = vld [vmem:[%s2331_s3 + $0x20] sm:$0xff]  ;;  %v1249_v4 = vld [vmem:[%s2331_s3 + $0x18] sm:$0xff]  ;;  %v1248_v12 = vld [vmem:[%s2331_s3 + $0x10] sm:$0xff] }
   0x3   :  { %v1263_v5 = vld [vmem:[%s2335_s0] sm:$0xff]   ;;  %v1247_v18 = vld [vmem:[%s2331_s3 + $0x8] sm:$0xff]  ;;  %v1375_v42 = vld [vmem:[%s2335_s0 + $0x10] sm:$0xff]  }
   0x4   :  { %v1377_v6 = vld [vmem:[%s2335_s0 + $0x20] sm:$0xff]   ;;  %v1264_v7 = vunpack.c.l.bf16 %v1263_v5  ;;  %v1265_v8 = vunpack.c.h.bf16 %v1263_v5  ;;  %v1374_v26 = vld [vmem:[%s2335_s0 + $0x8] sm:$0xff]   ;;  %v1379_v43 = vld [vmem:[%s2335_s0 + $0x30] sm:$0xff]   ;;  %v1272_v44 = vunpack.c.l.bf16 %v1375_v42  ;;  %v1273_v45 = vunpack.c.h.bf16 %v1375_v42 }
   0x5   :  { %v1517_v9 = vld [vmem:[%s2332_s1] ss:$0 sm:$0xff]  ;;  %v1280_v10 = vunpack.c.l.bf16 %v1377_v6  ;;  %v1281_v11 = vunpack.c.h.bf16 %v1377_v6  ;;  %v1378_v27 = vld [vmem:[%s2335_s0 + $0x28] sm:$0xff]   ;;  %v1268_v28 = vunpack.c.l.bf16 %v1374_v26  ;;  %v1269_v29 = vunpack.c.h.bf16 %v1374_v26  ;;  %v1376_v58 = vld [vmem:[%s2335_s0 + $0x18] sm:$0xff]  }
   0x6   :  { %177 = vmatpush.bf16.msra.mxu0 %v1252_v1  ;;  %1396 = vmatpush.bf16.msra.mxu2 %v1252_v1  ;;  %v64_v13 = vsub.f32 %v1264_v7, %v1517_v9  ;;  %v65_v14 = vsub.f32 %v1265_v8, %v1517_v9  ;;  %v1527_v15 = vld [vmem:[%s2333_s2] ss:$0 sm:$0xff]  ;;  %v1284_v30 = vunpack.c.l.bf16 %v1378_v27  ;;  %v1285_v31 = vunpack.c.h.bf16 %v1378_v27  ;;  %v1380_v59 = vld [vmem:[%s2335_s0 + $0x38] sm:$0xff]  }
   0x7   :  { %v72_v16 = vsub.f32 %v1280_v10, %v1517_v9  ;;  %v73_v17 = vsub.f32 %v1281_v11, %v1517_v9  ;;  %v1246_v23 = vld [vmem:[%s2331_s3] sm:$0xff]  ;;  %v66_v32 = vsub.f32 %v1268_v28, %v1517_v9  ;;  %v67_v33 = vsub.f32 %v1269_v29, %v1517_v9 }
   0x8   :  { %v84_v19 = vmul.f32 %v1527_v15, %v64_v13  ;;  %v85_v20 = vmul.f32 %v1527_v15, %v65_v14  ;;  %v74_v34 = vsub.f32 %v1284_v30, %v1517_v9  ;;  %v75_v35 = vsub.f32 %v1285_v31, %v1517_v9  ;;  %v1586_v11 = vld [vmem:[%s2334_s4] ss:$0 sm:$0xff] }
   0x9   :  { %v92_v21 = vmul.f32 %v1527_v15, %v72_v16  ;;  %v93_v22 = vmul.f32 %v1527_v15, %v73_v17  ;;  %v86_v36 = vmul.f32 %v1527_v15, %v66_v32  ;;  %v87_v37 = vmul.f32 %v1527_v15, %v67_v33 }
   0xa   :  { %178 = vmatpush.bf16.msra.mxu0 %v1251_v2  ;;  %1397 = vmatpush.bf16.msra.mxu2 %v1251_v2  ;;  %v100_v24 = vpack.c.bf16 %v85_v20, %v84_v19  ;;  %v94_v38 = vmul.f32 %v1527_v15, %v74_v34  ;;  %v95_v39 = vmul.f32 %v1527_v15, %v75_v35  ;;  %v1288_v46 = vunpack.c.l.bf16 %v1379_v43 }
   0xb   :  { %v104_v25 = vpack.c.bf16 %v93_v22, %v92_v21  ;;  %v101_v40 = vpack.c.bf16 %v87_v37, %v86_v36  ;;  %v1289_v47 = vunpack.c.h.bf16 %v1379_v43  ;;  %v68_v48 = vsub.f32 %v1272_v44, %v1517_v9 }
   0xc   :  { %v105_v41 = vpack.c.bf16 %v95_v39, %v94_v38  ;;  %v69_v49 = vsub.f32 %v1273_v45, %v1517_v9  ;;  %v76_v50 = vsub.f32 %v1288_v46, %v1517_v9  ;;  %v1276_v60 = vunpack.c.l.bf16 %v1376_v58 }
   0xd   :  { %v77_v51 = vsub.f32 %v1289_v47, %v1517_v9  ;;  %v88_v52 = vmul.f32 %v1527_v15, %v68_v48  ;;  %v1277_v61 = vunpack.c.h.bf16 %v1376_v58  ;;  %v1292_v62 = vunpack.c.l.bf16 %v1380_v59 }
   0xe   :  { %179 = vmatpush.bf16.msra.mxu0 %v1250_v3  ;;  %1398 = vmatpush.bf16.msra.mxu2 %v1250_v3  ;;  %v89_v53 = vmul.f32 %v1527_v15, %v69_v49  ;;  %v96_v54 = vmul.f32 %v1527_v15, %v76_v50  ;;  %v1293_v63 = vunpack.c.h.bf16 %v1380_v59  ;;  %v70_v0 = vsub.f32 %v1276_v60, %v1517_v9 }
   0xf   :  { %v97_v55 = vmul.f32 %v1527_v15, %v77_v51  ;;  %v71_v1 = vsub.f32 %v1277_v61, %v1517_v9  ;;  %v78_v2 = vsub.f32 %v1292_v62, %v1517_v9 }
  0x10   :  { %v102_v56 = vpack.c.bf16 %v89_v53, %v88_v52  ;;  %v79_v3 = vsub.f32 %v1293_v63, %v1517_v9 }
  0x11   :  { %v106_v57 = vpack.c.bf16 %v97_v55, %v96_v54  ;;  %v91_v5 = vmul.f32 %v1527_v15, %v71_v1  ;;  %v98_v6 = vmul.f32 %v1527_v15, %v78_v2 }
  0x12   :  { %180 = vmatpush.bf16.msra.mxu0 %v1249_v4  ;;  %1399 = vmatpush.bf16.msra.mxu2 %v1249_v4  ;;  %v90_v4 = vmul.f32 %v1527_v15, %v70_v0  ;;  %v99_v7 = vmul.f32 %v1527_v15, %v79_v3 }
  0x14   :  { %v103_v8 = vpack.c.bf16 %v91_v5, %v90_v4  ;;  %v107_v10 = vpack.c.bf16 %v99_v7, %v98_v6 }
  0x16   :  { %181 = vmatpush.bf16.msra.mxu0 %v1248_v12  ;;  %1400 = vmatpush.bf16.msra.mxu2 %v1248_v12 }
  0x1a   :  { %182 = vmatpush.bf16.msra.mxu0 %v1247_v18  ;;  %1401 = vmatpush.bf16.msra.mxu2 %v1247_v18 }
  0x1e   :  { %183 = vmatpush.bf16.msra.mxu0 %v1246_v23  ;;  %1402 = vmatpush.bf16.msra.mxu2 %v1246_v23 }
  0x21   :  { %184 = vmatmul.bf16.vlgmr.msra.gmra.mxu0 %v100_v24  ;;  %204 = vmatmul.bf16.vlgmr.msra.gmra.mxu2 %v104_v25 }
  0x31   :  { %189 = vmatmul.bf16.gmra.mxu0 %v101_v40  ;;  %209 = vmatmul.bf16.gmra.mxu2 %v105_v41 }
  0x41   :  { %194 = vmatmul.bf16.gmra.mxu0 %v102_v56  ;;  %214 = vmatmul.bf16.gmra.mxu2 %v106_v57 }
  0x51   :  { %199 = vmatmul.bf16.gmra.mxu0 %v103_v8  ;;  %219 = vmatmul.bf16.gmra.mxu2 %v107_v10 }
  0x9e   :  { %v185_v12 = vpop.f32.mrf.mxu0 }
  0x9f   :  { %v1589_v9 = vadd.f32 %v1586_v11, %v185_v12 }
  0xa1   :  { %v1592_v13 = vmul.f32 0.70710677, %v1589_v9 }
  0xa3   :  { %v257_v14 = vmul.f32 %v1592_v13, %v1592_v13 }
  0xa4   :  { %v205_v15 = vpop.f32.mrf.mxu2 }
  0xa5   :  { %v1596_v16 = vmin.f32 %v257_v14, 16.0  ;;  %v1599_v17 = vadd.f32 %v1586_v11, %v205_v15 }
  0xa6   :  { %v187_v18 = vpop.f32.mrf.mxu0 }
  0xa7   :  { %v259_v19 = vmul.f32 2.1237322e-06, %v1596_v16  ;;  %v270_v20 = vmul.f32 3.8918573e-05, %v1596_v16  ;;  %v1604_v21 = vadd.f32 %v1586_v11, %v187_v18  ;;  %v1607_v22 = vmul.f32 0.70710677, %v1599_v17 }
  0xa9   :  { %v260_v23 = vadd.f32 0.00028619796, %v259_v19  ;;  %v271_v24 = vadd.f32 0.001143296, %v270_v20  ;;  %v577_v25 = vmul.f32 %v1607_v22, %v1607_v22  ;;  %v1612_v26 = vmul.f32 0.70710677, %v1604_v21 }
  0xab   :  { %v261_v27 = vmul.f32 %v260_v23, %v1596_v16  ;;  %v272_v28 = vmul.f32 %v271_v24, %v1596_v16  ;;  %v1616_v29 = vmin.f32 %v577_v25, 16.0  ;;  %v297_v30 = vmul.f32 %v1612_v26, %v1612_v26 }
  0xac   :  { %v207_v31 = vpop.f32.mrf.mxu2 }
  0xad   :  { %v262_v32 = vadd.f32 0.0036580483, %v261_v27  ;;  %v273_v33 = vadd.f32 0.014752088, %v272_v28  ;;  %v1621_v34 = vadd.f32 %v1586_v11, %v207_v31  ;;  %v579_v35 = vmul.f32 2.1237322e-06, %v1616_v29 }
  0xae   :  { %v590_v36 = vmul.f32 3.8918573e-05, %v1616_v29  ;;  %v1625_v37 = vmin.f32 %v297_v30, 16.0  ;;  %v190_v51 = vpop.f32.mrf.mxu0 }
  0xaf   :  { %v263_v38 = vmul.f32 %v262_v32, %v1596_v16  ;;  %v274_v39 = vmul.f32 %v273_v33, %v1596_v16  ;;  %v1630_v40 = vmul.f32 0.70710677, %v1621_v34  ;;  %v580_v41 = vadd.f32 0.00028619796, %v579_v35 }
  0xb0   :  { %v591_v42 = vadd.f32 0.001143296, %v590_v36  ;;  %v299_v43 = vmul.f32 2.1237322e-06, %v1625_v37  ;;  %v310_v46 = vmul.f32 3.8918573e-05, %v1625_v37  ;;  %v1646_v62 = vadd.f32 %v1586_v11, %v190_v51 }
  0xb1   :  { %v264_v44 = vadd.f32 0.05243302, %v263_v38  ;;  %v275_v45 = vadd.f32 0.112945676, %v274_v39  ;;  %v617_v47 = vmul.f32 %v1630_v40, %v1630_v40  ;;  %v581_v48 = vmul.f32 %v580_v41, %v1616_v29 }
  0xb2   :  { %v592_v49 = vmul.f32 %v591_v42, %v1616_v29  ;;  %v300_v50 = vadd.f32 0.00028619796, %v299_v43  ;;  %v311_v54 = vadd.f32 0.001143296, %v310_v46  ;;  %v1656_v19 = vmul.f32 0.70710677, %v1646_v62 }
  0xb3   :  { %v265_v52 = vmul.f32 %v264_v44, %v1596_v16  ;;  %v276_v53 = vmul.f32 %v275_v45, %v1596_v16  ;;  %v1640_v55 = vmin.f32 %v617_v47, 16.0  ;;  %v582_v56 = vadd.f32 0.0036580483, %v581_v48 }
  0xb4   :  { %v593_v57 = vadd.f32 0.014752088, %v592_v49  ;;  %v301_v58 = vmul.f32 %v300_v50, %v1625_v37  ;;  %v312_v60 = vmul.f32 %v311_v54, %v1625_v37  ;;  %v337_v33 = vmul.f32 %v1656_v19, %v1656_v19 }
  0xb5   :  { %v277_v59 = vadd.f32 0.4994258, %v276_v53  ;;  %v619_v61 = vmul.f32 2.1237322e-06, %v1640_v55  ;;  %v583_v63 = vmul.f32 %v582_v56, %v1616_v29  ;;  %v630_v2 = vmul.f32 3.8918573e-05, %v1640_v55 }
  0xb6   :  { %v594_v0 = vmul.f32 %v593_v57, %v1616_v29  ;;  %v302_v1 = vadd.f32 0.0036580483, %v301_v58  ;;  %v266_v3 = vadd.f32 0.18741608, %v265_v52  ;;  %v313_v5 = vadd.f32 0.014752088, %v312_v60  ;;  %v210_v52 = vpop.f32.mrf.mxu2 }
  0xb7   :  { %v278_v4 = vmul.f32 %v277_v59, %v1596_v16  ;;  %v620_v6 = vadd.f32 0.00028619796, %v619_v61  ;;  %v584_v7 = vadd.f32 0.05243302, %v583_v63  ;;  %v631_v12 = vadd.f32 0.001143296, %v630_v2 }
  0xb8   :  { %v595_v8 = vadd.f32 0.112945676, %v594_v0  ;;  %v303_v10 = vmul.f32 %v302_v1, %v1625_v37  ;;  %v314_v15 = vmul.f32 %v313_v5, %v1625_v37  ;;  %v267_v27 = vmul.f32 %v266_v3, %v1596_v16 }
  0xb9   :  { %v279_v14 = vadd.f32 1.0, %v278_v4  ;;  %v621_v18 = vmul.f32 %v620_v6, %v1640_v55  ;;  %v585_v20 = vmul.f32 %v584_v7, %v1616_v29  ;;  %v632_v25 = vmul.f32 %v631_v12, %v1640_v55 }
  0xba   :  { %v596_v23 = vmul.f32 %v595_v8, %v1616_v29  ;;  %v304_v24 = vadd.f32 0.05243302, %v303_v10  ;;  %v315_v31 = vadd.f32 0.112945676, %v314_v15  ;;  %v1668_v42 = vmin.f32 %v337_v33, 16.0 }
  0xbb   :  { %1415 = vrcp.f32 %v279_v14  ;;  %v586_v28 = vadd.f32 0.18741608, %v585_v20  ;;  %v622_v32 = vadd.f32 0.0036580483, %v621_v18  ;;  %v633_v41 = vadd.f32 0.014752088, %v632_v25 }
  0xbc   :  { %v597_v30 = vadd.f32 0.4994258, %v596_v23  ;;  %v305_v36 = vmul.f32 %v304_v24, %v1625_v37  ;;  %v316_v38 = vmul.f32 %v315_v31, %v1625_v37  ;;  %v268_v43 = vadd.f32 1.1283791, %v267_v27 }
  0xbd   :  { %v623_v39 = vmul.f32 %v622_v32, %v1640_v55  ;;  %v587_v16 = vmul.f32 %v586_v28, %v1616_v29  ;;  %v634_v48 = vmul.f32 %v633_v41, %v1640_v55  ;;  %v339_v49 = vmul.f32 2.1237322e-06, %v1668_v42 }
  0xbe   :  { %v598_v35 = vmul.f32 %v597_v30, %v1616_v29  ;;  %v317_v46 = vadd.f32 0.4994258, %v316_v38  ;;  %v1676_v50 = vmul.f32 0.5, %v1589_v9  ;;  %v289_v53 = vand.u32 2147483647, %v279_v14 }
  0xbf   :  { %v624_v47 = vadd.f32 0.05243302, %v623_v39  ;;  %v291_v54 = vand.u32 2147483648, %v279_v14  ;;  %v1680_v29 = vmul.f32 0.5, %v1604_v21  ;;  %v306_v56 = vadd.f32 0.18741608, %v305_v36 }
  0xc0   :  { %v1671_v44 = vadd.f32 1.0, %v598_v35  ;;  %v318_v58 = vmul.f32 %v317_v46, %v1625_v37  ;;  %v635_v60 = vadd.f32 0.112945676, %v634_v48  ;;  %v269_v61 = vmul.f32 %v268_v43, %v1592_v13 }
  0xc1   :  { %v1416_v45 = vpop.eup %1415  ;;  %v625_v59 = vmul.f32 %v624_v47, %v1640_v55  ;;  %v588_v9 = vadd.f32 1.1283791, %v587_v16  ;;  %v340_v63 = vadd.f32 0.00028619796, %v339_v49  ;;  %v1686_v0 = vadd.f32 %v1586_v11, %v210_v52  ;;  %v192_v16 = vpop.f32.mrf.mxu0 }
  0xc2   :  { %v281_v51 = vmul.f32 %v1416_v45, %v279_v14  ;;  %1417 = vrcp.f32 %v1671_v44  ;;  %vm286_vm0 = vweird.f32 %v1416_v45  ;;  %v1688_v2 = vadd.f32 1.0, %v318_v58 }
  0xc3   :  { %v636_v21 = vmul.f32 %v635_v60, %v1640_v55  ;;  %vm285_vm1 = vweird.f32 %v279_v14  ;;  %vm1691_vm2 = vcmp.eq.f32.partialorder %v289_v53, 8.507059e+37  ;;  %v292_v4 = vor.u32 1.1754944e-38, %v291_v54 }
  0xc4   :  { %v282_v57 = vsub.f32 1.0, %v281_v51  ;;  %v626_v5 = vadd.f32 0.18741608, %v625_v59  ;;  %v307_v7 = vmul.f32 %v306_v56, %v1625_v37  ;;  %1419 = vrcp.f32 %v1688_v2  ;;  %vm287_vm3 = vmor %vm285_vm1, %vm286_vm0 }
  0xc5   :  { %v350_v8 = vmul.f32 3.8918573e-05, %v1668_v42  ;;  %v609_v12 = vand.u32 2147483647, %v1671_v44  ;;  %v341_v14 = vmul.f32 %v340_v63, %v1668_v42  ;;  %v1705_v15 = vmul.f32 0.70710677, %v1686_v0 }
  0xc6   :  { %v283_v1 = vmul.f32 %v1416_v45, %v282_v57  ;;  %v1708_v20 = vmul.f32 %v588_v9, %v1607_v22  ;;  %vm605_vm4 = vweird.f32 %v1671_v44  ;;  %v637_v37 = vadd.f32 0.4994258, %v636_v21 }
  0xc7   :  { %v611_v25 = vand.u32 2147483648, %v1671_v44  ;;  %v627_v27 = vmul.f32 %v626_v5, %v1640_v55  ;;  %v308_v30 = vadd.f32 1.1283791, %v307_v7  ;;  %v351_v32 = vadd.f32 0.001143296, %v350_v8  ;;  %v212_v8 = vpop.f32.mrf.mxu2 }
  0xc8   :  { %v1695_v6 = vpop.eup %1417  ;;  %v284_v13 = vadd.f32 %v1416_v45, %v283_v1  ;;  %v638_v31 = vmul.f32 %v637_v37, %v1640_v55  ;;  %vm1717_vm5 = vcmp.eq.f32.partialorder %v609_v12, 8.507059e+37  ;;  %v342_v35 = vadd.f32 0.0036580483, %v341_v14 }
  0xc9   :  { %v601_v10 = vmul.f32 %v1695_v6, %v1671_v44  ;;  %v657_v36 = vmul.f32 %v1705_v15, %v1705_v15  ;;  %v329_v39 = vand.u32 2147483647, %v1688_v2  ;;  %v331_v41 = vand.u32 2147483648, %v1688_v2 }
  0xca   :  { %v288_v18 = vsel %vm287_vm3, %v1416_v45, %v284_v13  ;;  %v1420_v38 = vpop.eup %1419  ;;  %v1725_v43 = vadd.f32 1.0, %v638_v31  ;;  %v352_v55 = vmul.f32 %v351_v32, %v1668_v42  ;;  %v1261_v45 = vld [vmem:[%s2336_s5 + $0x38] sm:$0xff]  ;;  %vm606_vm6 = vweird.f32 %v1695_v6 }
  0xcb   :  { %v293_v23 = vsel %vm1691_vm2, %v292_v4, %v288_v18  ;;  %v602_v24 = vsub.f32 1.0, %v601_v10  ;;  %v321_v47 = vmul.f32 %v1420_v38, %v1688_v2  ;;  %v628_v48 = vadd.f32 1.1283791, %v627_v27  ;;  %1077 = vmatpush.bf16.msra.mxu1 %v1261_v45  ;;  %1403 = vmatpush.bf16.msra.mxu3 %v1261_v45  ;;  %vm1744_vm7 = vmor %vm605_vm4, %vm606_vm6 }
  0xcc   :  { %v294_v28 = vmul.f32 %v293_v23, %v269_v61  ;;  %v612_v51 = vor.u32 1.1754944e-38, %v611_v25  ;;  %1421 = vrcp.f32 %v1725_v43  ;;  %v1735_v52 = vmin.f32 %v657_v36, 16.0 }
  0xcd   :  { %v603_v33 = vmul.f32 %v1695_v6, %v602_v24  ;;  %v309_v53 = vmul.f32 %v308_v30, %v1612_v26  ;;  %v322_v54 = vsub.f32 1.0, %v321_v47  ;;  %v343_v56 = vmul.f32 %v342_v35, %v1668_v42 }
  0xce   :  { %v1198_v49 = vclamps-f32 %v294_v28, 1.0  ;;  %v1740_v57 = vadd.f32 %v1586_v11, %v192_v16  ;;  %vm325_vm8 = vweird.f32 %v1688_v2  ;;  %vm1749_vm9 = vcmp.eq.f32.partialorder %v329_v39, 8.507059e+37 }
  0xcf   :  { %v604_v46 = vadd.f32 %v1695_v6, %v603_v33  ;;  %v332_v60 = vor.u32 1.1754944e-38, %v331_v41  ;;  %v353_v26 = vadd.f32 0.014752088, %v352_v55  ;;  %v323_v9 = vmul.f32 %v1420_v38, %v322_v54 }
  0xd0   :  { %vm326_vm10 = vweird.f32 %v1420_v38  ;;  %v629_v44 = vmul.f32 %v628_v48, %v1630_v40  ;;  %v897_v63 = vadd.f32 1.0, %v1198_v49  ;;  %v659_v21 = vmul.f32 2.1237322e-06, %v1735_v52 }
  0xd1   :  { %v608_v61 = vsel %vm1744_vm7, %v1695_v6, %v604_v46  ;;  %v354_v1 = vmul.f32 %v353_v26, %v1668_v42  ;;  %v670_v3 = vmul.f32 3.8918573e-05, %v1735_v52  ;;  %v324_v4 = vadd.f32 %v1420_v38, %v323_v9  ;;  %vm327_vm11 = vmor %vm325_vm8, %vm326_vm10 }
  0xd2   :  { %v649_v5 = vand.u32 2147483647, %v1725_v43  ;;  %v344_v13 = vadd.f32 0.05243302, %v343_v56  ;;  %v1762_v7 = vmul.f32 0.70710677, %v1740_v57  ;;  %v1422_v6 = vpop.eup %1421  ;;  %v613_v10 = vsel %vm1717_vm5, %v612_v51, %v608_v61  ;;  %v195_v61 = vpop.f32.mrf.mxu0 }
  0xd3   :  { %v355_v40 = vadd.f32 0.112945676, %v354_v1  ;;  %v660_v12 = vadd.f32 0.00028619796, %v659_v21  ;;  %v671_v14 = vadd.f32 0.001143296, %v670_v3  ;;  %v328_v18 = vsel %vm327_vm11, %v1420_v38, %v324_v4 }
  0xd4   :  { %v641_v37 = vmul.f32 %v1422_v6, %v1725_v43  ;;  %vm645_vm12 = vweird.f32 %v1725_v43  ;;  %v651_v23 = vand.u32 2147483648, %v1725_v43  ;;  %v1772_v24 = vmul.f32 %v897_v63, %v1676_v50 }
  0xd5   :  { %v333_v25 = vsel %vm1749_vm9, %v332_v60, %v328_v18  ;;  %v356_v27 = vmul.f32 %v355_v40, %v1668_v42  ;;  %v1778_v2 = vadd.f32 %v1586_v11, %v212_v8  ;;  %v614_v28 = vmul.f32 %v613_v10, %v1708_v20 }
  0xd6   :  { %v334_v30 = vmul.f32 %v333_v25, %v309_v53  ;;  %v642_v31 = vsub.f32 1.0, %v641_v37  ;;  %v672_v32 = vmul.f32 %v671_v14, %v1735_v52  ;;  %vm1782_vm13 = vcmp.eq.f32.partialorder %v649_v5, 8.507059e+37  ;;  %v1260_v5 = vld [vmem:[%s2336_s5 + $0x30] sm:$0xff] }
  0xd7   :  { %v357_v50 = vadd.f32 0.4994258, %v356_v27  ;;  %v661_v22 = vmul.f32 %v660_v12, %v1735_v52  ;;  %v377_v35 = vmul.f32 %v1762_v7, %v1762_v7  ;;  %vm646_vm14 = vweird.f32 %v1422_v6  ;;  %1078 = vmatpush.bf16.msra.mxu1 %v1260_v5  ;;  %1404 = vmatpush.bf16.msra.mxu3 %v1260_v5 }
  0xd8   :  { %v1199_v36 = vclamps-f32 %v334_v30, 1.0  ;;  %v643_v38 = vmul.f32 %v1422_v6, %v642_v31  ;;  %v673_v39 = vadd.f32 0.014752088, %v672_v32  ;;  %v652_v41 = vor.u32 1.1754944e-38, %v651_v23  ;;  %vm647_vm15 = vmor %vm645_vm12, %vm646_vm14 }
  0xd9   :  { %v358_v20 = vmul.f32 %v357_v50, %v1668_v42  ;;  %v1790_v55 = vmin.f32 %v377_v35, 16.0  ;;  %v1793_v16 = vmul.f32 0.70710677, %v1778_v2  ;;  %v1206_v45 = vclamps-f32 %v614_v28, 1.0 }
  0xda   :  { %v898_v46 = vadd.f32 1.0, %v1199_v36  ;;  %v644_v47 = vadd.f32 %v1422_v6, %v643_v38  ;;  %v674_v48 = vmul.f32 %v673_v39, %v1735_v52  ;;  %v662_v51 = vadd.f32 0.0036580483, %v661_v22 }
  0xdb   :  { %v1798_v49 = vadd.f32 1.0, %v358_v20  ;;  %v379_v53 = vmul.f32 2.1237322e-06, %v1790_v55  ;;  %v697_v54 = vmul.f32 %v1793_v16, %v1793_v16  ;;  %v390_v60 = vmul.f32 3.8918573e-05, %v1790_v55 }
  0xdc   :  { %v1804_v56 = vmul.f32 %v898_v46, %v1680_v29  ;;  %v648_v58 = vsel %vm647_vm15, %v1422_v6, %v644_v47  ;;  %v675_v59 = vadd.f32 0.112945676, %v674_v48  ;;  %v345_v43 = vmul.f32 %v344_v13, %v1668_v42 }
  0xdd   :  { %v653_v26 = vsel %vm1782_vm13, %v652_v41, %v648_v58  ;;  %1423 = vrcp.f32 %v1798_v49  ;;  %v233_v9 = vmul.f32 0.5, %v1599_v17  ;;  %v663_v29 = vmul.f32 %v662_v51, %v1735_v52 }
  0xde   :  { %v1297_v63 = vpack.c.bf16 %v1804_v56, %v1772_v24  ;;  %v654_v1 = vmul.f32 %v653_v26, %v629_v44  ;;  %v676_v21 = vmul.f32 %v675_v59, %v1735_v52  ;;  %v380_v3 = vadd.f32 0.00028619796, %v379_v53 }
  0xdf   :  { %v391_v4 = vadd.f32 0.001143296, %v390_v60  ;;  %v905_v13 = vadd.f32 1.0, %v1206_v45  ;;  %v1822_v8 = vmin.f32 %v697_v54, 16.0  ;;  %v1825_v44 = vadd.f32 %v1586_v11, %v195_v61 }
  0xe0   :  { %1298 = vst [vmem:[%s2337_s7] sm:$0xff] %v1297_v63   ;;  %v1207_v17 = vclamps-f32 %v654_v1, 1.0  ;;  %v346_v6 = vadd.f32 0.18741608, %v345_v43  ;;  %v677_v10 = vadd.f32 0.4994258, %v676_v21  ;;  %v381_v40 = vmul.f32 %v380_v3, %v1790_v55 }
  0xe1   :  { %v392_v12 = vmul.f32 %v391_v4, %v1790_v55  ;;  %v234_v14 = vmul.f32 0.5, %v1621_v34  ;;  %v699_v37 = vmul.f32 2.1237322e-06, %v1822_v8  ;;  %v710_v23 = vmul.f32 3.8918573e-05, %v1822_v8  ;;  %v1259_v34 = vld [vmem:[%s2336_s5 + $0x28] sm:$0xff] }
  0xe2   :  { %v906_v18 = vadd.f32 1.0, %v1207_v17  ;;  %v664_v27 = vadd.f32 0.05243302, %v663_v29  ;;  %v678_v28 = vmul.f32 %v677_v10, %v1735_v52  ;;  %v382_v30 = vadd.f32 0.0036580483, %v381_v40  ;;  %1079 = vmatpush.bf16.msra.mxu1 %v1259_v34  ;;  %1405 = vmatpush.bf16.msra.mxu3 %v1259_v34 }
  0xe3   :  { %v1424_v25 = vpop.eup %1423  ;;  %v393_v31 = vadd.f32 0.014752088, %v392_v12  ;;  %v1833_v32 = vmul.f32 %v905_v13, %v233_v9  ;;  %v1839_v22 = vmul.f32 0.70710677, %v1825_v44  ;;  %v700_v39 = vadd.f32 0.00028619796, %v699_v37 }
  0xe4   :  { %v1835_v33 = vmul.f32 %v906_v18, %v234_v14  ;;  %v361_v50 = vmul.f32 %v1424_v25, %v1798_v49  ;;  %v1844_v35 = vadd.f32 1.0, %v678_v28  ;;  %v383_v36 = vmul.f32 %v382_v30, %v1790_v55 }
  0xe5   :  { %v394_v38 = vmul.f32 %v393_v31, %v1790_v55  ;;  %v711_v45 = vadd.f32 0.001143296, %v710_v23  ;;  %v347_v46 = vmul.f32 %v346_v6, %v1668_v42  ;;  %vm365_vm0 = vweird.f32 %v1798_v49  ;;  %v215_v31 = vpop.f32.mrf.mxu2 }
  0xe6   :  { %v1317_v41 = vpack.c.bf16 %v1835_v33, %v1833_v32  ;;  %v362_v20 = vsub.f32 1.0, %v361_v50  ;;  %v665_v47 = vmul.f32 %v664_v27, %v1735_v52  ;;  %1425 = vrcp.f32 %v1844_v35 }
  0xe7   :  { %v384_v51 = vadd.f32 0.05243302, %v383_v36  ;;  %v395_v53 = vadd.f32 0.112945676, %v394_v38  ;;  %v701_v54 = vmul.f32 %v700_v39, %v1822_v8  ;;  %vm366_vm1 = vweird.f32 %v1424_v25 }
  0xe8   :  { %1384 = vst [vmem:[%s2337_s7 + $0x20] sm:$0xff] %v1317_v41   ;;  %v363_v48 = vmul.f32 %v1424_v25, %v362_v20  ;;  %v369_v58 = vand.u32 2147483647, %v1798_v49  ;;  %v712_v42 = vmul.f32 %v711_v45, %v1822_v8  ;;  %v417_v59 = vmul.f32 %v1839_v22, %v1839_v22  ;;  %vm1869_vm2 = vmor %vm365_vm0, %vm366_vm1  ;;  %v197_v20 = vpop.f32.mrf.mxu0 }
  0xe9   :  { %v371_v26 = vand.u32 2147483648, %v1798_v49  ;;  %v396_v43 = vmul.f32 %v395_v53, %v1790_v55  ;;  %v702_v61 = vadd.f32 0.0036580483, %v701_v54  ;;  %v666_v9 = vadd.f32 0.18741608, %v665_v47  ;;  %v1258_v47 = vld [vmem:[%s2336_s5 + $0x20] sm:$0xff] }
  0xea   :  { %v364_v60 = vadd.f32 %v1424_v25, %v363_v48  ;;  %v385_v63 = vmul.f32 %v384_v51, %v1790_v55  ;;  %v713_v1 = vadd.f32 0.014752088, %v712_v42  ;;  %v1865_v29 = vmin.f32 %v417_v59, 16.0  ;;  %1080 = vmatpush.bf16.msra.mxu1 %v1258_v47  ;;  %1406 = vmatpush.bf16.msra.mxu3 %v1258_v47 }
  0xeb   :  { %v397_v3 = vadd.f32 0.4994258, %v396_v43  ;;  %v703_v4 = vmul.f32 %v702_v61, %v1822_v8  ;;  %v348_v13 = vadd.f32 1.1283791, %v347_v46  ;;  %vm370_vm3 = vcmp.eq.f32.partialorder %v369_v58, 8.507059e+37 }
  0xec   :  { %v1874_v5 = vpop.eup %1425  ;;  %v368_v17 = vsel %vm1869_vm2, %v1424_v25, %v364_v60  ;;  %v714_v6 = vmul.f32 %v713_v1, %v1822_v8  ;;  %v430_v10 = vmul.f32 3.8918573e-05, %v1865_v29  ;;  %v372_v40 = vor.u32 1.1754944e-38, %v371_v26 }
  0xed   :  { %v681_v49 = vmul.f32 %v1874_v5, %v1844_v35  ;;  %v419_v12 = vmul.f32 2.1237322e-06, %v1865_v29  ;;  %v667_v14 = vmul.f32 %v666_v9, %v1735_v52  ;;  %v386_v18 = vadd.f32 0.18741608, %v385_v63  ;;  %v1257_v63 = vld [vmem:[%s2336_s5 + $0x18] sm:$0xff] }
  0xee   :  { %v398_v37 = vmul.f32 %v397_v3, %v1790_v55  ;;  %v715_v23 = vadd.f32 0.112945676, %v714_v6  ;;  %v373_v27 = vsel %vm370_vm3, %v372_v40, %v368_v17  ;;  %v704_v25 = vadd.f32 0.05243302, %v703_v4  ;;  %1081 = vmatpush.bf16.msra.mxu1 %v1257_v63  ;;  %1407 = vmatpush.bf16.msra.mxu3 %v1257_v63 }
  0xef   :  { %v682_v28 = vsub.f32 1.0, %v681_v49  ;;  %v431_v30 = vadd.f32 0.001143296, %v430_v10  ;;  %v349_v50 = vmul.f32 %v348_v13, %v1656_v19  ;;  %v1890_v38 = vmul.f32 0.5, %v1646_v62 }
  0xf0   :  { %v1886_v34 = vadd.f32 1.0, %v398_v37  ;;  %v716_v36 = vmul.f32 %v715_v23, %v1822_v8  ;;  %v420_v39 = vadd.f32 0.00028619796, %v419_v12  ;;  %v387_v46 = vmul.f32 %v386_v18, %v1790_v55 }
  0xf1   :  { %v683_v52 = vmul.f32 %v1874_v5, %v682_v28  ;;  %v432_v41 = vmul.f32 %v431_v30, %v1865_v29  ;;  %v374_v45 = vmul.f32 %v373_v27, %v349_v50  ;;  %v1897_v19 = vadd.f32 %v1586_v11, %v215_v31 }
  0xf2   :  { %1427 = vrcp.f32 %v1886_v34  ;;  %v668_v62 = vadd.f32 1.1283791, %v667_v14  ;;  %vm685_vm4 = vweird.f32 %v1844_v35  ;;  %v705_v48 = vmul.f32 %v704_v25, %v1822_v8 }
  0xf3   :  { %v717_v51 = vadd.f32 0.4994258, %v716_v36  ;;  %v684_v53 = vadd.f32 %v1874_v5, %v683_v52  ;;  %vm686_vm5 = vweird.f32 %v1874_v5  ;;  %v433_v55 = vadd.f32 0.014752088, %v432_v41 }
  0xf4   :  { %v1907_v54 = vadd.f32 %v1586_v11, %v197_v20  ;;  %v689_v58 = vand.u32 2147483647, %v1844_v35  ;;  %v691_v42 = vand.u32 2147483648, %v1844_v35  ;;  %v421_v60 = vmul.f32 %v420_v39, %v1865_v29  ;;  %vm1925_vm6 = vmor %vm685_vm4, %vm686_vm5 }
  0xf5   :  { %v718_v59 = vmul.f32 %v717_v51, %v1822_v8  ;;  %v1200_v26 = vclamps-f32 %v374_v45, 1.0  ;;  %v388_v43 = vadd.f32 1.1283791, %v387_v46  ;;  %v434_v61 = vmul.f32 %v433_v55, %v1865_v29 }
  0xf6   :  { %v1915_v9 = vmul.f32 0.70710677, %v1897_v19  ;;  %v669_v1 = vmul.f32 %v668_v62, %v1705_v15  ;;  %v1930_v3 = vmul.f32 0.5, %v1740_v57  ;;  %v706_v4 = vadd.f32 0.18741608, %v705_v48 }
  0xf7   :  { %v1932_v13 = vadd.f32 1.0, %v718_v59  ;;  %v688_v6 = vsel %vm1925_vm6, %v1874_v5, %v684_v53  ;;  %v435_v15 = vadd.f32 0.112945676, %v434_v61  ;;  %v1940_v35 = vmul.f32 0.70710677, %v1907_v54 }
  0xf8   :  { %v1428_v17 = vpop.eup %1427  ;;  %v737_v10 = vmul.f32 %v1915_v9, %v1915_v9  ;;  %vm690_vm7 = vcmp.eq.f32.partialorder %v689_v58, 8.507059e+37  ;;  %v692_v57 = vor.u32 1.1754944e-38, %v691_v42  ;;  %v422_v49 = vadd.f32 0.0036580483, %v421_v60 }
  0xf9   :  { %v401_v40 = vmul.f32 %v1428_v17, %v1886_v34  ;;  %v899_v12 = vadd.f32 1.0, %v1200_v26  ;;  %v389_v14 = vmul.f32 %v388_v43, %v1762_v7  ;;  %v411_v18 = vand.u32 2147483648, %v1886_v34 }
  0xfa   :  { %1429 = vrcp.f32 %v1932_v13  ;;  %v693_v5 = vsel %vm690_vm7, %v692_v57, %v688_v6  ;;  %v707_v23 = vmul.f32 %v706_v4, %v1822_v8  ;;  %v436_v27 = vmul.f32 %v435_v15, %v1865_v29 }
  0xfb   :  { %v402_v37 = vsub.f32 1.0, %v401_v40  ;;  %vm405_vm8 = vweird.f32 %v1886_v34  ;;  %v409_v28 = vand.u32 2147483647, %v1886_v34  ;;  %v1950_v25 = vmin.f32 %v737_v10, 16.0 }
  0xfc   :  { %v457_v30 = vmul.f32 %v1940_v35, %v1940_v35  ;;  %vm406_vm9 = vweird.f32 %v1428_v17  ;;  %v423_v31 = vmul.f32 %v422_v49, %v1865_v29  ;;  %v437_v50 = vadd.f32 0.4994258, %v436_v27 }
  0xfd   :  { %v403_v7 = vmul.f32 %v1428_v17, %v402_v37  ;;  %v694_v36 = vmul.f32 %v693_v5, %v669_v1  ;;  %v739_v52 = vmul.f32 2.1237322e-06, %v1950_v25  ;;  %v750_v8 = vmul.f32 3.8918573e-05, %v1950_v25  ;;  %vm407_vm10 = vmor %vm405_vm8, %vm406_vm9  ;;  %v217_v1 = vpop.f32.mrf.mxu2  ;;  %v200_v5 = vpop.f32.mrf.mxu0 }
  0xfe   :  { %v1957_v39 = vmin.f32 %v457_v30, 16.0  ;;  %v412_v20 = vor.u32 1.1754944e-38, %v411_v18  ;;  %v708_v45 = vadd.f32 1.1283791, %v707_v23  ;;  %v438_v46 = vmul.f32 %v437_v50, %v1865_v29 }
  0xff   :  { %v404_v41 = vadd.f32 %v1428_v17, %v403_v7  ;;  %v1961_v62 = vmul.f32 %v899_v12, %v1890_v38  ;;  %v740_v48 = vadd.f32 0.00028619796, %v739_v52  ;;  %v751_v51 = vadd.f32 0.001143296, %v750_v8 }
 0x100   :  { %v1430_v47 = vpop.eup %1429  ;;  %v459_v53 = vmul.f32 2.1237322e-06, %v1957_v39  ;;  %vm410_vm11 = vcmp.eq.f32.partialorder %v409_v28, 8.507059e+37  ;;  %v424_v42 = vadd.f32 0.05243302, %v423_v31  ;;  %v1208_v59 = vclamps-f32 %v694_v36, 1.0 }
 0x101   :  { %v408_v55 = vsel %vm407_vm10, %v1428_v17, %v404_v41  ;;  %v721_v58 = vmul.f32 %v1430_v47, %v1932_v13  ;;  %v1967_v26 = vadd.f32 1.0, %v438_v46  ;;  %v752_v43 = vmul.f32 %v751_v51, %v1950_v25 }
 0x102   :  { %v413_v60 = vsel %vm410_vm11, %v412_v20, %v408_v55  ;;  %v741_v34 = vmul.f32 %v740_v48, %v1950_v25  ;;  %v460_v63 = vadd.f32 0.00028619796, %v459_v53  ;;  %v709_v21 = vmul.f32 %v708_v45, %v1793_v16  ;;  %v1256_v53 = vld [vmem:[%s2336_s5 + $0x10] sm:$0xff] }
 0x103   :  { %v414_v38 = vmul.f32 %v413_v60, %v389_v14  ;;  %v722_v61 = vsub.f32 1.0, %v721_v58  ;;  %v729_v4 = vand.u32 2147483647, %v1932_v13  ;;  %v731_v17 = vand.u32 2147483648, %v1932_v13  ;;  %1082 = vmatpush.bf16.msra.mxu1 %v1256_v53  ;;  %1408 = vmatpush.bf16.msra.mxu3 %v1256_v53 }
 0x104   :  { %1431 = vrcp.f32 %v1967_v26  ;;  %vm726_vm12 = vweird.f32 %v1430_v47  ;;  %v753_v10 = vadd.f32 0.014752088, %v752_v43  ;;  %vm725_vm13 = vweird.f32 %v1932_v13 }
 0x105   :  { %v1201_v6 = vclamps-f32 %v414_v38, 1.0  ;;  %v723_v15 = vmul.f32 %v1430_v47, %v722_v61  ;;  %v461_v57 = vmul.f32 %v460_v63, %v1957_v39  ;;  %v470_v40 = vmul.f32 3.8918573e-05, %v1957_v39  ;;  %vm727_vm14 = vmor %vm725_vm13, %vm726_vm12 }
 0x106   :  { %v1979_v49 = vadd.f32 %v1586_v11, %v217_v1  ;;  %v742_v14 = vadd.f32 0.0036580483, %v741_v34  ;;  %v754_v18 = vmul.f32 %v753_v10, %v1950_v25  ;;  %v732_v37 = vor.u32 1.1754944e-38, %v731_v17 }
 0x107   :  { %v900_v16 = vadd.f32 1.0, %v1201_v6  ;;  %v724_v12 = vadd.f32 %v1430_v47, %v723_v15  ;;  %v425_v23 = vmul.f32 %v424_v42, %v1865_v29  ;;  %v462_v27 = vadd.f32 0.0036580483, %v461_v57 }
 0x108   :  { %v471_v28 = vadd.f32 0.001143296, %v470_v40  ;;  %vm730_vm15 = vcmp.eq.f32.partialorder %v729_v4, 8.507059e+37  ;;  %v755_v7 = vadd.f32 0.112945676, %v754_v18  ;;  %v1993_v8 = vadd.f32 %v1586_v11, %v200_v5 }
 0x109   :  { %v1984_v13 = vmul.f32 %v900_v16, %v1930_v3  ;;  %v728_v30 = vsel %vm727_vm14, %v1430_v47, %v724_v12  ;;  %v1990_v52 = vmul.f32 0.70710677, %v1979_v49  ;;  %v743_v45 = vmul.f32 %v742_v14, %v1950_v25  ;;  %v220_v16 = vpop.f32.mrf.mxu2 }
 0x10a   :  { %v1986_v31 = vpop.eup %1431  ;;  %v733_v50 = vsel %vm730_vm15, %v732_v37, %v728_v30  ;;  %v472_v36 = vmul.f32 %v471_v28, %v1957_v39  ;;  %v907_v46 = vadd.f32 1.0, %v1208_v59  ;;  %v756_v47 = vmul.f32 %v755_v7, %v1950_v25 }
 0x10b   :  { %v1302_v41 = vpack.c.bf16 %v1984_v13, %v1961_v62  ;;  %v734_v20 = vmul.f32 %v733_v50, %v709_v21  ;;  %v441_v3 = vmul.f32 %v1986_v31, %v1967_v26  ;;  %v463_v48 = vmul.f32 %v462_v27, %v1957_v39 }
 0x10c   :  { %v473_v51 = vadd.f32 0.014752088, %v472_v36  ;;  %v235_v55 = vmul.f32 0.5, %v1686_v0  ;;  %v777_v59 = vmul.f32 %v1990_v52, %v1990_v52  ;;  %v236_v60 = vmul.f32 0.5, %v1778_v2  ;;  %v1255_v2 = vld [vmem:[%s2336_s5 + $0x8] sm:$0xff] }
 0x10d   :  { %1381 = vst [vmem:[%s2337_s7 + $0x8] sm:$0xff] %v1302_v41   ;;  %v1209_v58 = vclamps-f32 %v734_v20, 1.0  ;;  %v442_v42 = vsub.f32 1.0, %v441_v3  ;;  %v757_v43 = vadd.f32 0.4994258, %v756_v47  ;;  %1083 = vmatpush.bf16.msra.mxu1 %v1255_v2  ;;  %1409 = vmatpush.bf16.msra.mxu3 %v1255_v2  ;;  %v451_v28 = vand.u32 2147483648, %v1967_v26 }
 0x10e   :  { %v474_v38 = vmul.f32 %v473_v51, %v1957_v39  ;;  %v2014_v61 = vmul.f32 0.70710677, %v1993_v8  ;;  %v426_v34 = vadd.f32 0.18741608, %v425_v23  ;;  %v744_v63 = vadd.f32 0.05243302, %v743_v45 }
 0x10f   :  { %v908_v0 = vadd.f32 1.0, %v1209_v58  ;;  %v2016_v1 = vmin.f32 %v777_v59, 16.0  ;;  %v2018_v21 = vmul.f32 %v907_v46, %v235_v55  ;;  %v758_v4 = vmul.f32 %v757_v43, %v1950_v25 }
 0x110   :  { %v464_v17 = vadd.f32 0.05243302, %v463_v48  ;;  %v475_v6 = vadd.f32 0.112945676, %v474_v38  ;;  %v443_v10 = vmul.f32 %v1986_v31, %v442_v42  ;;  %v497_v18 = vmul.f32 %v2014_v61, %v2014_v61 }
 0x111   :  { %v2024_v15 = vmul.f32 %v908_v0, %v236_v60  ;;  %v779_v57 = vmul.f32 2.1237322e-06, %v2016_v1  ;;  %v790_v40 = vmul.f32 3.8918573e-05, %v2016_v1  ;;  %v2029_v12 = vadd.f32 1.0, %v758_v4 }
 0x112   :  { %v476_v14 = vmul.f32 %v475_v6, %v1957_v39  ;;  %v427_v27 = vmul.f32 %v426_v34, %v1865_v29  ;;  %v2040_v30 = vadd.f32 %v1586_v11, %v220_v16  ;;  %v444_v7 = vadd.f32 %v1986_v31, %v443_v10  ;;  %v1254_v11 = vld [vmem:[%s2336_s5] sm:$0xff] }
 0x113   :  { %v1322_v5 = vpack.c.bf16 %v2024_v15, %v2018_v21  ;;  %v780_v37 = vadd.f32 0.00028619796, %v779_v57  ;;  %v791_v23 = vadd.f32 0.001143296, %v790_v40  ;;  %1433 = vrcp.f32 %v2029_v12  ;;  %1084 = vmatpush.bf16.msra.mxu1 %v1254_v11  ;;  %1410 = vmatpush.bf16.msra.mxu3 %v1254_v11 }
 0x114   :  { %vm446_vm0 = vweird.f32 %v1986_v31  ;;  %v745_v50 = vmul.f32 %v744_v63, %v1950_v25  ;;  %v465_v36 = vmul.f32 %v464_v17, %v1957_v39  ;;  %v477_v29 = vadd.f32 0.4994258, %v476_v14 }
 0x115   :  { %1385 = vst [vmem:[%s2337_s7 + $0x28] sm:$0xff] %v1322_v5   ;;  %v781_v41 = vmul.f32 %v780_v37, %v2016_v1  ;;  %v792_v20 = vmul.f32 %v791_v23, %v2016_v1  ;;  %v2051_v3 = vmin.f32 %v497_v18, 16.0  ;;  %vm445_vm1 = vweird.f32 %v1967_v26 }
 0x116   :  { %v449_v45 = vand.u32 2147483647, %v1967_v26  ;;  %v428_v46 = vadd.f32 1.1283791, %v427_v27  ;;  %vm2058_vm2 = vmor %vm445_vm1, %vm446_vm0  ;;  %v478_v48 = vmul.f32 %v477_v29, %v1957_v39  ;;  %v452_v58 = vor.u32 1.1754944e-38, %v451_v28 }
 0x117   :  { %v782_v51 = vadd.f32 0.0036580483, %v781_v41  ;;  %v793_v53 = vadd.f32 0.014752088, %v792_v20  ;;  %v448_v55 = vsel %vm2058_vm2, %v1986_v31, %v444_v7  ;;  %v746_v42 = vadd.f32 0.18741608, %v745_v50 }
 0x118   :  { %v510_v59 = vmul.f32 3.8918573e-05, %v2051_v3  ;;  %v466_v60 = vadd.f32 0.18741608, %v465_v36  ;;  %v2069_v43 = vadd.f32 1.0, %v478_v48  ;;  %vm450_vm3 = vcmp.eq.f32.partialorder %v449_v45, 8.507059e+37 }
 0x119   :  { %v2067_v26 = vpop.eup %1433  ;;  %v794_v38 = vmul.f32 %v793_v53, %v2016_v1  ;;  %v2073_v0 = vmul.f32 0.70710677, %v2040_v30  ;;  %v783_v31 = vmul.f32 %v782_v51, %v2016_v1  ;;  %v453_v4 = vsel %vm450_vm3, %v452_v58, %v448_v55 }
 0x11a   :  { %v761_v34 = vmul.f32 %v2067_v26, %v2029_v12  ;;  %v511_v63 = vadd.f32 0.001143296, %v510_v59  ;;  %1435 = vrcp.f32 %v2069_v43  ;;  %v429_v17 = vmul.f32 %v428_v46, %v1839_v22  ;;  %v202_v59 = vpop.f32.mrf.mxu0 }
 0x11b   :  { %v747_v6 = vmul.f32 %v746_v42, %v1950_v25  ;;  %v795_v2 = vadd.f32 0.112945676, %v794_v38  ;;  %v467_v57 = vmul.f32 %v466_v60, %v1957_v39  ;;  %v817_v16 = vmul.f32 %v2073_v0, %v2073_v0 }
 0x11c   :  { %v762_v10 = vsub.f32 1.0, %v761_v34  ;;  %v512_v40 = vmul.f32 %v511_v63, %v2051_v3  ;;  %v454_v14 = vmul.f32 %v453_v4, %v429_v17  ;;  %v784_v18 = vadd.f32 0.05243302, %v783_v31 }
 0x11d   :  { %v796_v5 = vmul.f32 %v795_v2, %v2016_v1  ;;  %v499_v37 = vmul.f32 2.1237322e-06, %v2051_v3  ;;  %v769_v23 = vand.u32 2147483647, %v2029_v12  ;;  %v771_v22 = vand.u32 2147483648, %v2029_v12 }
 0x11e   :  { %v513_v25 = vadd.f32 0.014752088, %v512_v40  ;;  %v2089_v27 = vmin.f32 %v817_v16, 16.0  ;;  %v748_v28 = vadd.f32 1.1283791, %v747_v6  ;;  %vm765_vm4 = vweird.f32 %v2029_v12  ;;  %v222_v6 = vpop.f32.mrf.mxu2 }
 0x11f   :  { %v797_v39 = vadd.f32 0.4994258, %v796_v5  ;;  %v763_v50 = vmul.f32 %v2067_v26, %v762_v10  ;;  %v468_v36 = vadd.f32 1.1283791, %v467_v57  ;;  %v1202_v20 = vclamps-f32 %v454_v14, 1.0 }
 0x120   :  { %v1436_v7 = vpop.eup %1435  ;;  %v514_v29 = vmul.f32 %v513_v25, %v2051_v3  ;;  %v830_v41 = vmul.f32 3.8918573e-05, %v2089_v27  ;;  %v785_v45 = vmul.f32 %v784_v18, %v2016_v1  ;;  %v500_v46 = vadd.f32 0.00028619796, %v499_v37  ;;  %v1447_v57 = vld [vmem:[%s2334_s4] ss:$0 sm:$0xff] }
 0x121   :  { %v481_v11 = vmul.f32 %v1436_v7, %v2069_v43  ;;  %vm2097_vm5 = vcmp.eq.f32.partialorder %v769_v23, 8.507059e+37  ;;  %v772_v48 = vor.u32 1.1754944e-38, %v771_v22  ;;  %v798_v51 = vmul.f32 %v797_v39, %v2016_v1 }
 0x122   :  { %v515_v53 = vadd.f32 0.112945676, %v514_v29  ;;  %vm766_vm6 = vweird.f32 %v2067_v26  ;;  %v489_v58 = vand.u32 2147483647, %v2069_v43  ;;  %v491_v42 = vand.u32 2147483648, %v2069_v43 }
 0x123   :  { %v482_v55 = vsub.f32 1.0, %v481_v11  ;;  %v764_v60 = vadd.f32 %v2067_v26, %v763_v50  ;;  %v2106_v38 = vadd.f32 1.0, %v798_v51  ;;  %v831_v31 = vadd.f32 0.001143296, %v830_v41  ;;  %vm2121_vm8 = vmor %vm765_vm4, %vm766_vm6 }
 0x124   :  { %v516_v34 = vmul.f32 %v515_v53, %v2051_v3  ;;  %vm486_vm7 = vweird.f32 %v1436_v7  ;;  %v786_v4 = vadd.f32 0.18741608, %v785_v45  ;;  %v501_v17 = vmul.f32 %v500_v46, %v2051_v3 }
 0x125   :  { %v483_v63 = vmul.f32 %v1436_v7, %v482_v55  ;;  %v901_v2 = vadd.f32 1.0, %v1202_v20  ;;  %v469_v10 = vmul.f32 %v468_v36, %v1940_v35  ;;  %1437 = vrcp.f32 %v2106_v38 }
 0x126   :  { %v2115_v40 = vadd.f32 %v1447_v57, %v202_v59  ;;  %vm485_vm9 = vweird.f32 %v2069_v43  ;;  %v517_v35 = vadd.f32 0.4994258, %v516_v34  ;;  %v819_v18 = vmul.f32 2.1237322e-06, %v2089_v27 }
 0x127   :  { %v484_v14 = vadd.f32 %v1436_v7, %v483_v63  ;;  %v768_v5 = vsel %vm2121_vm8, %v2067_v26, %v764_v60  ;;  %vm487_vm10 = vmor %vm485_vm9, %vm486_vm7  ;;  %v492_v37 = vor.u32 1.1754944e-38, %v491_v42  ;;  %v832_v23 = vmul.f32 %v831_v31, %v2089_v27 }
 0x128   :  { %v2132_v12 = vadd.f32 %v1447_v57, %v222_v6  ;;  %vm490_vm11 = vcmp.eq.f32.partialorder %v489_v58, 8.507059e+37  ;;  %v787_v25 = vmul.f32 %v786_v4, %v2016_v1  ;;  %v502_v39 = vadd.f32 0.0036580483, %v501_v17 }
 0x129   :  { %v488_v22 = vsel %vm487_vm10, %v1436_v7, %v484_v14  ;;  %v518_v50 = vmul.f32 %v517_v35, %v2051_v3  ;;  %v833_v36 = vadd.f32 0.014752088, %v832_v23  ;;  %v2137_v29 = vmul.f32 0.70710677, %v2115_v40 }
 0x12a   :  { %v493_v43 = vsel %vm490_vm11, %v492_v37, %v488_v22  ;;  %v229_v26 = vmul.f32 0.5, %v1825_v44  ;;  %v773_v41 = vsel %vm2097_vm5, %v772_v48, %v768_v5  ;;  %v820_v11 = vadd.f32 0.00028619796, %v819_v18 }
 0x12b   :  { %v494_v20 = vmul.f32 %v493_v43, %v469_v10  ;;  %v1438_v45 = vpop.eup %1437  ;;  %v749_v7 = vmul.f32 %v748_v28, %v1915_v9  ;;  %v834_v1 = vmul.f32 %v833_v36, %v2089_v27  ;;  %v537_v46 = vmul.f32 %v2137_v29, %v2137_v29 }
 0x12c   :  { %v2147_v51 = vmul.f32 0.70710677, %v2132_v12  ;;  %v2149_v53 = vmul.f32 %v901_v2, %v229_v26  ;;  %v230_v44 = vmul.f32 0.5, %v1907_v54  ;;  %v801_v47 = vmul.f32 %v1438_v45, %v2106_v38 }
 0x12d   :  { %v1203_v55 = vclamps-f32 %v494_v20, 1.0  ;;  %v774_v48 = vmul.f32 %v773_v41, %v749_v7  ;;  %v788_v58 = vadd.f32 1.1283791, %v787_v25  ;;  %v503_v42 = vmul.f32 %v502_v39, %v2051_v3 }
 0x12e   :  { %v2154_v9 = vadd.f32 1.0, %v518_v50  ;;  %v802_v59 = vsub.f32 1.0, %v801_v47  ;;  %v821_v60 = vmul.f32 %v820_v11, %v2089_v27  ;;  %v835_v34 = vadd.f32 0.112945676, %v834_v1 }
 0x12f   :  { %v902_v28 = vadd.f32 1.0, %v1203_v55  ;;  %v809_v31 = vand.u32 2147483647, %v2106_v38  ;;  %v811_v63 = vand.u32 2147483648, %v2106_v38  ;;  %v2159_v4 = vmin.f32 %v537_v46, 16.0 }
 0x130   :  { %v857_v54 = vmul.f32 %v2147_v51, %v2147_v51  ;;  %v803_v6 = vmul.f32 %v1438_v45, %v802_v59  ;;  %vm806_vm12 = vweird.f32 %v1438_v45  ;;  %v836_v2 = vmul.f32 %v835_v34, %v2089_v27 }
 0x131   :  { %v2163_v17 = vmul.f32 %v902_v28, %v230_v44  ;;  %1439 = vrcp.f32 %v2154_v9  ;;  %v539_v10 = vmul.f32 2.1237322e-06, %v2159_v4  ;;  %v550_v57 = vmul.f32 3.8918573e-05, %v2159_v4 }
 0x132   :  { %v2169_v16 = vmin.f32 %v857_v54, 16.0  ;;  %v804_v35 = vadd.f32 %v1438_v45, %v803_v6  ;;  %vm805_vm13 = vweird.f32 %v2106_v38  ;;  %v837_v18 = vadd.f32 0.4994258, %v836_v2 }
 0x133   :  { %v1307_v14 = vpack.c.bf16 %v2163_v17, %v2149_v53  ;;  %v1210_v5 = vclamps-f32 %v774_v48, 1.0  ;;  %vm807_vm14 = vmor %vm805_vm13, %vm806_vm12  ;;  %v812_v37 = vor.u32 1.1754944e-38, %v811_v63  ;;  %v540_v23 = vadd.f32 0.00028619796, %v539_v10 }
 0x134   :  { %v551_v22 = vadd.f32 0.001143296, %v550_v57  ;;  %v789_v25 = vmul.f32 %v788_v58, %v1990_v52  ;;  %v808_v39 = vsel %vm807_vm14, %v1438_v45, %v804_v35  ;;  %vm810_vm15 = vcmp.eq.f32.partialorder %v809_v31, 8.507059e+37 }
 0x135   :  { %1382 = vst [vmem:[%s2337_s7 + $0x10] sm:$0xff] %v1307_v14   ;;  %v859_v43 = vmul.f32 2.1237322e-06, %v2169_v16  ;;  %v813_v50 = vsel %vm810_vm15, %v812_v37, %v808_v39  ;;  %v838_v36 = vmul.f32 %v837_v18, %v2089_v27  ;;  %v541_v38 = vmul.f32 %v540_v23, %v2159_v4 }
 0x136   :  { %v552_v26 = vmul.f32 %v551_v22, %v2159_v4  ;;  %v237_v41 = vmul.f32 0.5, %v1897_v19  ;;  %v814_v20 = vmul.f32 %v813_v50, %v789_v25  ;;  %v822_v11 = vadd.f32 0.0036580483, %v821_v60 }
 0x137   :  { %v2183_v7 = vpop.eup %1439  ;;  %v238_v1 = vmul.f32 0.5, %v1979_v49  ;;  %v504_v52 = vadd.f32 0.05243302, %v503_v42  ;;  %v2186_v45 = vadd.f32 1.0, %v838_v36  ;;  %v909_v44 = vadd.f32 1.0, %v1210_v5 }
 0x138   :  { %v553_v46 = vadd.f32 0.014752088, %v552_v26  ;;  %v1211_v55 = vclamps-f32 %v814_v20, 1.0  ;;  %v860_v47 = vadd.f32 0.00028619796, %v859_v43  ;;  %v929_v19 = vpack.c.bf16 %v1772_v24, %v1772_v24 }
 0x139   :  { %v870_v48 = vmul.f32 3.8918573e-05, %v2169_v16  ;;  %1441 = vrcp.f32 %v2186_v45  ;;  %v542_v58 = vadd.f32 0.0036580483, %v541_v38  ;;  %v930_v28 = vpack.c.bf16 %v1804_v56, %v1804_v56 }
 0x13a   :  { %v910_v59 = vadd.f32 1.0, %v1211_v55  ;;  %v521_v49 = vmul.f32 %v2183_v7, %v2154_v9  ;;  %v823_v42 = vmul.f32 %v822_v11, %v2089_v27  ;;  %v554_v60 = vmul.f32 %v553_v46, %v2159_v4 }
 0x13b   :  { %v505_v34 = vmul.f32 %v504_v52, %v2051_v3  ;;  %v871_v31 = vadd.f32 0.001143296, %v870_v48  ;;  %v2199_v63 = vmul.f32 %v909_v44, %v237_v41  ;;  %v861_v24 = vmul.f32 %v860_v47, %v2169_v16 }
 0x13c   :  { %v2201_v54 = vmul.f32 %v910_v59, %v238_v1  ;;  %v555_v6 = vadd.f32 0.112945676, %v554_v60  ;;  %v543_v56 = vmul.f32 %v542_v58, %v2159_v4  ;;  %v997_v10 = vunpack.c.l.b16 %v929_v19 }
 0x13d   :  { %v872_v2 = vmul.f32 %v871_v31, %v2169_v16  ;;  %v998_v57 = vunpack.c.l.b16 %v930_v28  ;;  %v522_v35 = vsub.f32 1.0, %v521_v49  ;;  %v824_v18 = vadd.f32 0.05243302, %v823_v42 }
 0x13e   :  { %v1327_v14 = vpack.c.bf16 %v2201_v54, %v2199_v63  ;;  %v556_v5 = vmul.f32 %v555_v6, %v2159_v4  ;;  %v937_v25 = vpack.c.bf16 %v1833_v32, %v1833_v32  ;;  %v506_v39 = vadd.f32 0.18741608, %v505_v34 }
 0x13f   :  { %v2209_v37 = vpop.eup %1441  ;;  %v873_v23 = vadd.f32 0.014752088, %v872_v2  ;;  %v1013_v22 = vpack.c.b16 %v998_v57, %v997_v10  ;;  %v862_v43 = vadd.f32 0.0036580483, %v861_v24  ;;  %v544_v50 = vadd.f32 0.05243302, %v543_v56 }
 0x140   :  { %1386 = vst [vmem:[%s2337_s7 + $0x30] sm:$0xff] %v1327_v14   ;;  %v557_v36 = vadd.f32 0.4994258, %v556_v5  ;;  %v938_v26 = vpack.c.bf16 %v1835_v33, %v1835_v33  ;;  %v523_v41 = vmul.f32 %v2183_v7, %v522_v35  ;;  %v825_v20 = vmul.f32 %v824_v18, %v2089_v27 }
 0x141   :  { %v874_v38 = vmul.f32 %v873_v23, %v2169_v16  ;;  %1085 = vmatmul.bf16.vlgmr.msra.gmra.mxu1 %v1013_v22  ;;  %v841_v32 = vmul.f32 %v2209_v37, %v2186_v45  ;;  %v1005_v52 = vunpack.c.l.b16 %v937_v25  ;;  %v507_v44 = vmul.f32 %v506_v39, %v2051_v3 }
 0x142   :  { %v558_v11 = vmul.f32 %v557_v36, %v2159_v4  ;;  %v1006_v46 = vunpack.c.l.b16 %v938_v26  ;;  %vm525_vm0 = vweird.f32 %v2154_v9  ;;  %v863_v55 = vmul.f32 %v862_v43, %v2169_v16 }
 0x143   :  { %v875_v1 = vadd.f32 0.112945676, %v874_v38  ;;  %v931_v33 = vpack.c.bf16 %v1961_v62, %v1961_v62  ;;  %v545_v47 = vmul.f32 %v544_v50, %v2159_v4  ;;  %v524_v28 = vadd.f32 %v2183_v7, %v523_v41 }
 0x144   :  { %v2230_v48 = vadd.f32 1.0, %v558_v11  ;;  %v1017_v19 = vpack.c.b16 %v1006_v46, %v1005_v52  ;;  %vm526_vm1 = vweird.f32 %v2183_v7  ;;  %v842_v59 = vsub.f32 1.0, %v841_v32 }
 0x145   :  { %v876_v58 = vmul.f32 %v875_v1, %v2169_v16  ;;  %v932_v3 = vpack.c.bf16 %v1984_v13, %v1984_v13  ;;  %v529_v49 = vand.u32 2147483647, %v2154_v9  ;;  %v531_v42 = vand.u32 2147483648, %v2154_v9  ;;  %vm2242_vm2 = vmor %vm525_vm0, %vm526_vm1 }
 0x146   :  { %v826_v62 = vadd.f32 0.18741608, %v825_v20  ;;  %1443 = vrcp.f32 %v2230_v48  ;;  %1105 = vmatmul.bf16.vlgmr.msra.gmra.mxu3 %v1017_v19  ;;  %v864_v60 = vadd.f32 0.05243302, %v863_v55  ;;  %v999_v31 = vunpack.c.l.b16 %v931_v33 }
 0x147   :  { %v877_v34 = vadd.f32 0.4994258, %v876_v58  ;;  %v1000_v6 = vunpack.c.l.b16 %v932_v3  ;;  %v546_v56 = vadd.f32 0.18741608, %v545_v47  ;;  %v939_v13 = vpack.c.bf16 %v2018_v21, %v2018_v21 }
 0x148   :  { %v528_v2 = vsel %vm2242_vm2, %v2183_v7, %v524_v28  ;;  %v843_v10 = vmul.f32 %v2209_v37, %v842_v59  ;;  %v508_v35 = vadd.f32 1.1283791, %v507_v44  ;;  %v532_v18 = vor.u32 1.1754944e-38, %v531_v42 }
 0x149   :  { %v878_v57 = vmul.f32 %v877_v34, %v2169_v16  ;;  %v1014_v14 = vpack.c.b16 %v1000_v6, %v999_v31  ;;  %v827_v9 = vmul.f32 %v826_v62, %v2089_v27  ;;  %v940_v5 = vpack.c.bf16 %v2024_v15, %v2024_v15 }
 0x14a   :  { %vm530_vm3 = vcmp.eq.f32.partialorder %v529_v49, 8.507059e+37  ;;  %v865_v23 = vmul.f32 %v864_v60, %v2169_v16  ;;  %v547_v7 = vmul.f32 %v546_v56, %v2159_v4  ;;  %v1007_v39 = vunpack.c.l.b16 %v939_v13 }
 0x14b   :  { %v2257_v21 = vadd.f32 1.0, %v878_v57  ;;  %v533_v25 = vsel %vm530_vm3, %v532_v18, %v528_v2  ;;  %v1008_v43 = vunpack.c.l.b16 %v940_v5  ;;  %v844_v50 = vadd.f32 %v2209_v37, %v843_v10 }
 0x14c   :  { %v1444_v22 = vpop.eup %1443  ;;  %vm846_vm4 = vweird.f32 %v2209_v37  ;;  %v509_v15 = vmul.f32 %v508_v35, %v2014_v61  ;;  %v828_v36 = vadd.f32 1.1283791, %v827_v9  ;;  %v851_v38 = vand.u32 2147483648, %v2186_v45 }
 0x14d   :  { %v561_v27 = vmul.f32 %v1444_v22, %v2230_v48  ;;  %1445 = vrcp.f32 %v2257_v21  ;;  %v1018_v26 = vpack.c.b16 %v1008_v43, %v1007_v39  ;;  %vm845_vm5 = vweird.f32 %v2186_v45 }
 0x14e   :  { %v849_v4 = vand.u32 2147483647, %v2186_v45  ;;  %v866_v20 = vadd.f32 0.18741608, %v865_v23  ;;  %v534_v32 = vmul.f32 %v533_v25, %v509_v15  ;;  %vm2268_vm6 = vmor %vm845_vm5, %vm846_vm4  ;;  %v548_v1 = vadd.f32 1.1283791, %v547_v7 }
 0x14f   :  { %v562_v41 = vsub.f32 1.0, %v561_v27  ;;  %v571_v52 = vand.u32 2147483648, %v2230_v48  ;;  %v848_v61 = vsel %vm2268_vm6, %v2209_v37, %v844_v50  ;;  %vm566_vm7 = vweird.f32 %v1444_v22 }
 0x150   :  { %v569_v44 = vand.u32 2147483647, %v2230_v48  ;;  %v829_v45 = vmul.f32 %v828_v36, %v2073_v0  ;;  %v852_v55 = vor.u32 1.1754944e-38, %v851_v38  ;;  %vm850_vm8 = vcmp.eq.f32.partialorder %v849_v4, 8.507059e+37 }
 0x151   :  { %1090 = vmatmul.bf16.gmra.mxu1 %v1014_v14  ;;  %v563_v46 = vmul.f32 %v1444_v22, %v562_v41  ;;  %vm565_vm9 = vweird.f32 %v2230_v48  ;;  %v867_v58 = vmul.f32 %v866_v20, %v2169_v16  ;;  %v572_v28 = vor.u32 1.1754944e-38, %v571_v52 }
 0x152   :  { %v853_v19 = vsel %vm850_vm8, %v852_v55, %v848_v61  ;;  %vm567_vm10 = vmor %vm565_vm9, %vm566_vm7  ;;  %v934_v37 = vpack.c.bf16 %v2163_v17, %v2163_v17  ;;  %v1204_v3 = vclamps-f32 %v534_v32, 1.0  ;;  %v549_v49 = vmul.f32 %v548_v1, %v2137_v29 }
 0x153   :  { %v1446_v33 = vpop.eup %1445  ;;  %v564_v47 = vadd.f32 %v1444_v22, %v563_v46  ;;  %vm570_vm11 = vcmp.eq.f32.partialorder %v569_v44, 8.507059e+37  ;;  %v933_v48 = vpack.c.bf16 %v2149_v53, %v2149_v53  ;;  %v854_v16 = vmul.f32 %v853_v19, %v829_v45  ;;  %v1414_v44 = vld [vmem:[%s2338_s6] ss:$0 sm:$0xff] }
 0x154   :  { %v881_v59 = vmul.f32 %v1446_v33, %v2257_v21  ;;  %v868_v34 = vadd.f32 1.1283791, %v867_v58  ;;  %v891_v31 = vand.u32 2147483648, %v2257_v21  ;;  %vm886_vm12 = vweird.f32 %v1446_v33 }
 0x155   :  { %v568_v0 = vsel %vm567_vm10, %v1444_v22, %v564_v47  ;;  %v889_v17 = vand.u32 2147483647, %v2257_v21  ;;  %v1002_v24 = vunpack.c.l.b16 %v934_v37  ;;  %v231_v29 = vmul.f32 0.5, %v1993_v8 }
 0x156   :  { %v573_v42 = vsel %vm570_vm11, %v572_v28, %v568_v0  ;;  %v882_v62 = vsub.f32 1.0, %v881_v59  ;;  %1110 = vmatmul.bf16.gmra.mxu3 %v1018_v26  ;;  %v903_v56 = vadd.f32 1.0, %v1204_v3  ;;  %v232_v13 = vmul.f32 0.5, %v2115_v40 }
 0x157   :  { %v574_v60 = vmul.f32 %v573_v42, %v549_v49  ;;  %vm885_vm13 = vweird.f32 %v2257_v21  ;;  %v1001_v53 = vunpack.c.l.b16 %v933_v48  ;;  %v942_v57 = vpack.c.bf16 %v2201_v54, %v2201_v54 }
 0x158   :  { %v883_v6 = vmul.f32 %v1446_v33, %v882_v62  ;;  %v1212_v14 = vclamps-f32 %v854_v16, 1.0  ;;  %v869_v18 = vmul.f32 %v868_v34, %v2147_v51  ;;  %vm887_vm14 = vmor %vm885_vm13, %vm886_vm12  ;;  %v892_v9 = vor.u32 1.1754944e-38, %v891_v31 }
 0x159   :  { %v1205_v2 = vclamps-f32 %v574_v60, 1.0  ;;  %vm890_vm15 = vcmp.eq.f32.partialorder %v889_v17, 8.507059e+37  ;;  %v1015_v8 = vpack.c.b16 %v1002_v24, %v1001_v53  ;;  %v941_v40 = vpack.c.bf16 %v2199_v63, %v2199_v63 }
 0x15a   :  { %v884_v10 = vadd.f32 %v1446_v33, %v883_v6  ;;  %v919_v23 = vmul.f32 %v903_v56, %v231_v29  ;;  %v1010_v7 = vunpack.c.l.b16 %v942_v57  ;;  %v911_v43 = vadd.f32 1.0, %v1212_v14 }
 0x15b   :  { %v904_v35 = vadd.f32 1.0, %v1205_v2  ;;  %v1009_v50 = vunpack.c.l.b16 %v941_v40  ;;  %v239_v51 = vmul.f32 0.5, %v2040_v30  ;;  %v240_v27 = vmul.f32 0.5, %v2132_v12 }
 0x15c   :  { %v888_v5 = vsel %vm887_vm14, %v1446_v33, %v884_v10  ;;  %v935_v41 = vpack.c.bf16 %v919_v23, %v919_v23 }
 0x15d   :  { %v920_v22 = vmul.f32 %v904_v35, %v232_v13  ;;  %v893_v25 = vsel %vm890_vm15, %v892_v9, %v888_v5  ;;  %v1019_v63 = vpack.c.b16 %v1010_v7, %v1009_v50  ;;  %v927_v36 = vmul.f32 %v911_v43, %v239_v51 }
 0x15e   :  { %v894_v21 = vmul.f32 %v893_v25, %v869_v18  ;;  %v1003_v32 = vunpack.c.l.b16 %v935_v41 }
 0x15f   :  { %v1312_v39 = vpack.c.bf16 %v920_v22, %v919_v23  ;;  %v936_v26 = vpack.c.bf16 %v920_v22, %v920_v22  ;;  %v943_v52 = vpack.c.bf16 %v927_v36, %v927_v36 }
 0x160   :  { %v1213_v54 = vclamps-f32 %v894_v21, 1.0 }
 0x161   :  { %1095 = vmatmul.bf16.gmra.mxu1 %v1015_v8  ;;  %1383 = vst [vmem:[%s2337_s7 + $0x18] sm:$0xff] %v1312_v39   ;;  %v1004_v20 = vunpack.c.l.b16 %v936_v26  ;;  %v1011_v12 = vunpack.c.l.b16 %v943_v52 }
 0x162   :  { %v912_v15 = vadd.f32 1.0, %v1213_v54 }
 0x163   :  { %v1016_v1 = vpack.c.b16 %v1004_v20, %v1003_v32 }
 0x164   :  { %v928_v38 = vmul.f32 %v912_v15, %v240_v27 }
 0x166   :  { %v1332_v4 = vpack.c.bf16 %v928_v38, %v927_v36  ;;  %1115 = vmatmul.bf16.gmra.mxu3 %v1019_v63  ;;  %v944_v11 = vpack.c.bf16 %v928_v38, %v928_v38 }
 0x168   :  { %1387 = vst [vmem:[%s2337_s7 + $0x38] sm:$0xff] %v1332_v4   ;;  %v1012_v30 = vunpack.c.l.b16 %v944_v11 }
 0x16a   :  { %v1020_v61 = vpack.c.b16 %v1012_v30, %v1011_v12 }
 0x171   :  { %1100 = vmatmul.bf16.gmra.mxu1 %v1016_v1 }
 0x176   :  { %1120 = vmatmul.bf16.gmra.mxu3 %v1020_v61 }
 0x1be   :  { %v1086_v46 = vpop.f32.mrf.mxu1 }
 0x1bf   :  { %v1087_v55 = vadd.f32 %v1414_v44, %v1086_v46 }
 0x1c6   :  { %v1088_v45 = vpop.f32.mrf.mxu1 }
 0x1c7   :  { %v1089_v33 = vadd.f32 %v1414_v44, %v1088_v45 }
 0x1c9   :  { %v1337_v47 = vpack.c.bf16 %v1089_v33, %v1087_v55  ;;  %v1106_v58 = vpop.f32.mrf.mxu3 }
 0x1ca   :  { %v1107_v59 = vadd.f32 %v1414_v44, %v1106_v58 }
 0x1cb   :  { %1338 = vst [vmem:[%s2339_s8] sm:$0xff] %v1337_v47  }
 0x1ce   :  { %v1091_v19 = vpop.f32.mrf.mxu1 }
 0x1cf   :  { %v1092_v0 = vadd.f32 %v1414_v44, %v1091_v19 }
 0x1d1   :  { %v1108_v28 = vpop.f32.mrf.mxu3 }
 0x1d2   :  { %v1109_v37 = vadd.f32 %v1414_v44, %v1108_v28 }
 0x1d4   :  { %v1357_v3 = vpack.c.bf16 %v1109_v37, %v1107_v59 }
 0x1d6   :  { %v1093_v49 = vpop.f32.mrf.mxu1  ;;  %1391 = vst [vmem:[%s2339_s8 + $0x20] sm:$0xff] %v1357_v3  }
 0x1d7   :  { %v1094_v42 = vadd.f32 %v1414_v44, %v1093_v49 }
 0x1d9   :  { %v1342_v62 = vpack.c.bf16 %v1094_v42, %v1092_v0  ;;  %v1111_v48 = vpop.f32.mrf.mxu3 }
 0x1da   :  { %v1112_v34 = vadd.f32 %v1414_v44, %v1111_v48 }
 0x1db   :  { %1388 = vst [vmem:[%s2339_s8 + $0x8] sm:$0xff] %v1342_v62  }
 0x1de   :  { %v1096_v16 = vpop.f32.mrf.mxu1 }
 0x1df   :  { %v1097_v24 = vadd.f32 %v1414_v44, %v1096_v16 }
 0x1e1   :  { %v1113_v60 = vpop.f32.mrf.mxu3 }
 0x1e2   :  { %v1114_v31 = vadd.f32 %v1414_v44, %v1113_v60 }
 0x1e4   :  { %v1362_v6 = vpack.c.bf16 %v1114_v31, %v1112_v34 }
 0x1e6   :  { %v1098_v17 = vpop.f32.mrf.mxu1  ;;  %1392 = vst [vmem:[%s2339_s8 + $0x28] sm:$0xff] %v1362_v6  }
 0x1e7   :  { %v1099_v29 = vadd.f32 %v1414_v44, %v1098_v17 }
 0x1e9   :  { %v1347_v56 = vpack.c.bf16 %v1099_v29, %v1097_v24  ;;  %v1116_v13 = vpop.f32.mrf.mxu3 }
 0x1ea   :  { %v1117_v53 = vadd.f32 %v1414_v44, %v1116_v13 }
 0x1eb   :  { %1389 = vst [vmem:[%s2339_s8 + $0x10] sm:$0xff] %v1347_v56  }
 0x1ee   :  { %v1101_v2 = vpop.f32.mrf.mxu1 }
 0x1ef   :  { %v1102_v18 = vadd.f32 %v1414_v44, %v1101_v2 }
 0x1f1   :  { %v1118_v10 = vpop.f32.mrf.mxu3 }
 0x1f2   :  { %v1119_v57 = vadd.f32 %v1414_v44, %v1118_v10 }
 0x1f4   :  { %v1367_v14 = vpack.c.bf16 %v1119_v57, %v1117_v53 }
 0x1f6   :  { %v1103_v35 = vpop.f32.mrf.mxu1  ;;  %1393 = vst [vmem:[%s2339_s8 + $0x30] sm:$0xff] %v1367_v14  }
 0x1f7   :  { %v1104_v9 = vadd.f32 %v1414_v44, %v1103_v35 }
 0x1f9   :  { %v1352_v5 = vpack.c.bf16 %v1104_v9, %v1102_v18  ;;  %v1121_v8 = vpop.f32.mrf.mxu3 }
 0x1fa   :  { %v1122_v23 = vadd.f32 %v1414_v44, %v1121_v8 }
 0x1fb   :  { %1390 = vst [vmem:[%s2339_s8 + $0x18] sm:$0xff] %v1352_v5  }
 0x201   :  { %v1123_v40 = vpop.f32.mrf.mxu3 }
 0x202   :  { %v1124_v22 = vadd.f32 %v1414_v44, %v1123_v40 }
 0x204   :  { %v1372_v25 = vpack.c.bf16 %v1124_v22, %v1122_v23 }
 0x206   :  { %1394 = vst [vmem:[%s2339_s8 + $0x38] sm:$0xff] %v1372_v25  }

// kernel: _lambda_.2
= control target key start
LH: loop header
LB: loop body
LE: loop exit
PB: predicated region body
PF: predicated region fallthrough
CT: control target
= control target key end

     0   :  { %vm96_vm0 = vcmask 261120   ;;  %v204_v36 = vlaneseq  ;;  %v871_v41 = vmov 0.0   ;;  %s1144_s4 = inlined_call_operand.vmem [shape: bf16[128,128], index: 4, kind: input, shape index: {}]   ;;  %s1145_s1 = inlined_call_operand.vmem [shape: bf16[32,128], index: 1, kind: input, shape index: {}]   ;;  %s1146_s0 = inlined_call_operand.vmem [shape: bf16[1,128,32], index: 0, kind: input, shape index: {}]   ;;  %s1147_s3 = inlined_call_operand.vmem [shape: f32[1,16,128], index: 3, kind: input, shape index: {}]   ;;  %s1148_s2 = inlined_call_operand.vmem [shape: f32[1,16,128], index: 2, kind: input, shape index: {}]   ;;  %s1149_s5 = inlined_call_operand.vmem [shape: bf16[1,128,128], index: 5, kind: output, shape index: {0}]   ;;  %s1150_s6 = inlined_call_operand.vmem [shape: f32[1,16,128], index: 6, kind: output, shape index: {1}]   ;;  %s1151_s7 = inlined_call_operand.vmem [shape: f32[1,16,128], index: 7, kind: output, shape index: {2}]  }
   0x1   :  { %v915_v0 = vld [vmem:[%s1144_s4 + $0x38] sm:$0xff]  ;;  %v780_v1 = vld [vmem:[%s1145_s1 + $0x8] sm:$0xff]  ;;  %v924_v2 = vld [vmem:[%s1144_s4 + $0x30] sm:$0xff] }
   0x2   :  { %276 = vmatpush.bf16.msra.mxu1 %v915_v0  ;;  %325 = vmatpush.bf16.msra.mxu2 %v915_v0  ;;  %v779_v3 = vld [vmem:[%s1145_s1] sm:$0xff]  ;;  %v934_v4 = vld [vmem:[%s1144_s4 + $0x28] sm:$0xff]  ;;  %v954_v7 = vld [vmem:[%s1144_s4 + $0x18] sm:$0xff]  ;;  %v205_v37 = vshrl.u32 %v204_v36, 7 }
   0x3   :  { %127 = vmatpush.bf16.msra.mxu0 %v780_v1  ;;  %836 = vmatpush.bf16.msra.mxu3 %v780_v1  ;;  %v771_v5 = vld [vmem:[%s1146_s0] sm:$0xff]  ;;  %v962_v8 = vld [vmem:[%s1144_s4 + $0x10] sm:$0xff]  ;;  %v970_v9 = vld [vmem:[%s1144_s4 + $0x8] sm:$0xff] }
   0x4   :  { %v945_v6 = vld [vmem:[%s1144_s4 + $0x20] sm:$0xff]  ;;  %v222_v12 = vld [vmem:[%s1147_s3 + $0x8] sm:$0xff]  ;;  %v777_v15 = vld [vmem:[%s1146_s0 + $0x30] sm:$0xff]  ;;  %vm211_vm1 = vcmp.lt.s32.totalorder %v205_v37, 2 }
   0x5   :  { %v978_v10 = vld [vmem:[%s1144_s4] sm:$0xff]  ;;  %v772_v14 = vld [vmem:[%s1146_s0 + $0x8] sm:$0xff]  ;;  %v778_v34 = vld [vmem:[%s1146_s0 + $0x38] sm:$0xff]  ;;  %v1064_v42 = vsel %vm211_vm1, 1.0, %v871_v41 }
   0x6   :  { %277 = vmatpush.bf16.msra.mxu1 %v924_v2  ;;  %326 = vmatpush.bf16.msra.mxu2 %v924_v2  ;;  %v221_v11 = vld [vmem:[%s1147_s3] sm:$0xff]  ;;  %v1036_v22 = vld [vmem:[%s1148_s2 + $0x8] sm:$0xff]  ;;  %v773_v35 = vld [vmem:[%s1146_s0 + $0x10] sm:$0xff] }
   0x7   :  { %128 = vmatpush.bf16.msra.mxu0 %v779_v3  ;;  %837 = vmatpush.bf16.msra.mxu3 %v779_v3  ;;  %v227_v13 = vpack.c.bf16 %v222_v12, %v221_v11  ;;  %v1028_v17 = vld [vmem:[%s1148_s2] sm:$0xff] }
   0xa   :  { %278 = vmatpush.bf16.msra.mxu1 %v934_v4  ;;  %716 = vmatmul.msk.bf16.vlgmr.msra.gmra.mxu0 %vm96_vm0, %v771_v5 }
   0xb   :  { %375 = vmatpush.bf16.msrb.mxu3 %v915_v0  ;;  %327 = vmatpush.bf16.msra.mxu2 %v934_v4 }
   0xc   :  { %722 = vmatmul.msk.bf16.vlgmr.msra.gmra.mxu3 %vm96_vm0, %v777_v15 }
   0xe   :  { %279 = vmatpush.bf16.msra.mxu1 %v945_v6 }
   0xf   :  { %376 = vmatpush.bf16.msrb.mxu3 %v924_v2  ;;  %328 = vmatpush.bf16.msra.mxu2 %v945_v6 }
  0x12   :  { %280 = vmatpush.bf16.msra.mxu1 %v954_v7 }
  0x13   :  { %377 = vmatpush.bf16.msrb.mxu3 %v934_v4  ;;  %329 = vmatpush.bf16.msra.mxu2 %v954_v7 }
  0x16   :  { %281 = vmatpush.bf16.msra.mxu1 %v962_v8 }
  0x17   :  { %378 = vmatpush.bf16.msrb.mxu3 %v945_v6  ;;  %330 = vmatpush.bf16.msra.mxu2 %v962_v8 }
  0x1a   :  { %282 = vmatpush.bf16.msra.mxu1 %v970_v9  ;;  %717 = vmatmul.msk.bf16.gmra.mxu0 %vm96_vm0, %v772_v14 }
  0x1b   :  { %379 = vmatpush.bf16.msrb.mxu3 %v954_v7  ;;  %331 = vmatpush.bf16.msra.mxu2 %v970_v9 }
  0x1c   :  { %723 = vmatmul.msk.bf16.gmra.mxu3 %vm96_vm0, %v778_v34 }
  0x1e   :  { %283 = vmatpush.bf16.msra.mxu1 %v978_v10 }
  0x1f   :  { %380 = vmatpush.bf16.msrb.mxu3 %v962_v8  ;;  %332 = vmatpush.bf16.msra.mxu2 %v978_v10 }
  0x21   :  { %284 = vmatmul.bf16.vlgmr.msra.gmra.mxu1 %v227_v13 }
  0x22   :  { %425 = vmatpush.bf16.msrb.mxu1 %v915_v0 }
  0x23   :  { %381 = vmatpush.bf16.msrb.mxu3 %v970_v9  ;;  %475 = vmatpush.bf16.msrb.mxu2 %v915_v0 }
  0x26   :  { %426 = vmatpush.bf16.msrb.mxu1 %v924_v2 }
  0x27   :  { %382 = vmatpush.bf16.msrb.mxu3 %v978_v10  ;;  %476 = vmatpush.bf16.msrb.mxu2 %v924_v2 }
  0x2a   :  { %427 = vmatpush.bf16.msrb.mxu1 %v934_v4  ;;  %718 = vmatmul.msk.bf16.gmra.mxu0 %vm96_vm0, %v773_v35  ;;  %v775_v35 = vld [vmem:[%s1146_s0 + $0x20] sm:$0xff] }
  0x2b   :  { %477 = vmatpush.bf16.msrb.mxu2 %v934_v4  ;;  %525 = vmatpush.bf16.msra.mxu3 %v915_v0 }
  0x2e   :  { %428 = vmatpush.bf16.msrb.mxu1 %v945_v6 }
  0x2f   :  { %478 = vmatpush.bf16.msrb.mxu2 %v945_v6  ;;  %526 = vmatpush.bf16.msra.mxu3 %v924_v2 }
  0x32   :  { %429 = vmatpush.bf16.msrb.mxu1 %v954_v7 }
  0x33   :  { %479 = vmatpush.bf16.msrb.mxu2 %v954_v7  ;;  %527 = vmatpush.bf16.msra.mxu3 %v934_v4 }
  0x36   :  { %430 = vmatpush.bf16.msrb.mxu1 %v962_v8 }
  0x37   :  { %480 = vmatpush.bf16.msrb.mxu2 %v962_v8  ;;  %528 = vmatpush.bf16.msra.mxu3 %v945_v6 }
  0x3a   :  { %431 = vmatpush.bf16.msrb.mxu1 %v970_v9 }
  0x3b   :  { %481 = vmatpush.bf16.msrb.mxu2 %v970_v9  ;;  %529 = vmatpush.bf16.msra.mxu3 %v954_v7 }
  0x3e   :  { %432 = vmatpush.bf16.msrb.mxu1 %v978_v10 }
  0x3f   :  { %482 = vmatpush.bf16.msrb.mxu2 %v978_v10  ;;  %530 = vmatpush.bf16.msra.mxu3 %v962_v8 }
  0x42   :  { %575 = vmatpush.bf16.msra.mxu1 %v915_v0 }
  0x43   :  { %531 = vmatpush.bf16.msra.mxu3 %v970_v9 }
  0x46   :  { %576 = vmatpush.bf16.msra.mxu1 %v924_v2 }
  0x47   :  { %532 = vmatpush.bf16.msra.mxu3 %v978_v10 }
  0x4a   :  { %577 = vmatpush.bf16.msra.mxu1 %v934_v4 }
  0x4e   :  { %578 = vmatpush.bf16.msra.mxu1 %v945_v6 }
  0x52   :  { %579 = vmatpush.bf16.msra.mxu1 %v954_v7 }
  0x56   :  { %580 = vmatpush.bf16.msra.mxu1 %v962_v8 }
  0x5a   :  { %581 = vmatpush.bf16.msra.mxu1 %v970_v9 }
  0x5e   :  { %582 = vmatpush.bf16.msra.mxu1 %v978_v10 }
  0x87   :  { %v130_v16 = vpop.f32.mrf.mxu0 }
  0x88   :  { %v225_v18 = vadd.f32 %v1028_v17, %v130_v16 }
  0x8f   :  { %v132_v21 = vpop.f32.mrf.mxu0 }
  0x90   :  { %v226_v23 = vadd.f32 %v1036_v22, %v132_v21 }
  0x97   :  { %v135_v38 = vpop.f32.mrf.mxu0 }
  0x98   :  { %v317_v39 = vadd.f32 %v1028_v17, %v135_v38 }
  0x9e   :  { %v285_v19 = vpop.f32.mrf.mxu1 }
  0x9f   :  { %v290_v20 = vadd.f32 %v285_v19, %v225_v18  ;;  %v137_v45 = vpop.f32.mrf.mxu0 }
  0xa0   :  { %v318_v46 = vadd.f32 %v1036_v22, %v137_v45 }
  0xa1   :  { %839 = vtanh.f32 %v290_v20 }
  0xa6   :  { %v287_v24 = vpop.f32.mrf.mxu1 }
  0xa7   :  { %v291_v25 = vadd.f32 %v287_v24, %v226_v23  ;;  %v840_v26 = vpop.eup %839 }
  0xa8   :  { %v294_v27 = vpack.c.bf16 %v840_v26, %v840_v26  ;;  %v298_v44 = vmul.f32 %v840_v26, %v1064_v42 }
  0xa9   :  { %841 = vtanh.f32 %v291_v25 }
  0xaa   :  { %v321_v31 = vunpack.c.l.b16 %v294_v27  ;;  %v308_v47 = vmul.f32 %v840_v26, %v298_v44 }
  0xaf   :  { %v842_v28 = vpop.eup %841 }
  0xb0   :  { %v792_v29 = vpack.c.bf16 %v842_v28, %v840_v26  ;;  %v295_v30 = vpack.c.bf16 %v842_v28, %v842_v28  ;;  %v299_v52 = vmul.f32 0.0, %v842_v28 }
  0xb2   :  { %793 = vst [vmem:[%s1149_s5] sm:$0xff] %v792_v29   ;;  %v322_v32 = vunpack.c.l.b16 %v295_v30  ;;  %v309_v56 = vmul.f32 %v842_v28, %v299_v52 }
  0xb4   :  { %v323_v33 = vpack.c.b16 %v322_v32, %v321_v31 }
  0xb6   :  { %333 = vmatmul.bf16.vlgmr.msra.gmra.mxu2 %v323_v33 }
  0xb7   :  { %625 = vmatpush.bf16.msra.mxu2 %v915_v0 }
  0xbb   :  { %626 = vmatpush.bf16.msra.mxu2 %v924_v2 }
  0xbf   :  { %627 = vmatpush.bf16.msra.mxu2 %v934_v4  ;;  %v1072_v4 = vpop.f32.mrf.mxu3 }
  0xc3   :  { %628 = vmatpush.bf16.msra.mxu2 %v945_v6  ;;  %v774_v6 = vld [vmem:[%s1146_s0 + $0x18] sm:$0xff] }
  0xc4   :  { %719 = vmatmul.msk.bf16.gmra.mxu0 %vm96_vm0, %v774_v6 }
  0xc7   :  { %629 = vmatpush.bf16.msra.mxu2 %v954_v7  ;;  %v1074_v5 = vpop.f32.mrf.mxu3 }
  0xcb   :  { %630 = vmatpush.bf16.msra.mxu2 %v962_v8 }
  0xcf   :  { %631 = vmatpush.bf16.msra.mxu2 %v970_v9  ;;  %v1079_v7 = vpop.f32.mrf.mxu3  ;;  %v140_v9 = vpop.f32.mrf.mxu0 }
  0xd3   :  { %632 = vmatpush.bf16.msra.mxu2 %v978_v10  ;;  %v367_v10 = vadd.f32 %v1028_v17, %v140_v9 }
  0xd4   :  { %720 = vmatmul.msk.bf16.gmra.mxu0 %vm96_vm0, %v775_v35 }
  0xd7   :  { %v1082_v8 = vpop.f32.mrf.mxu3  ;;  %v142_v13 = vpop.f32.mrf.mxu0 }
  0xd8   :  { %v368_v14 = vadd.f32 %v1036_v22, %v142_v13 }
 0x139   :  { %v334_v40 = vpop.f32.mrf.mxu2 }
 0x13a   :  { %v339_v43 = vadd.f32 %v334_v40, %v317_v39 }
 0x13c   :  { %843 = vtanh.f32 %v339_v43 }
 0x141   :  { %v336_v48 = vpop.f32.mrf.mxu2  ;;  %v145_v36 = vpop.f32.mrf.mxu0 }
 0x142   :  { %v844_v49 = vpop.eup %843  ;;  %v340_v50 = vadd.f32 %v336_v48, %v318_v46  ;;  %v417_v37 = vadd.f32 %v1028_v17, %v145_v36 }
 0x143   :  { %v348_v51 = vmul.f32 %v844_v49, %v1064_v42  ;;  %v343_v57 = vpack.c.bf16 %v844_v49, %v844_v49 }
 0x144   :  { %845 = vtanh.f32 %v340_v50 }
 0x145   :  { %v352_v53 = vadd.f32 %v348_v51, %v298_v44  ;;  %v358_v54 = vmul.f32 %v844_v49, %v348_v51  ;;  %v371_v0 = vunpack.c.l.b16 %v343_v57 }
 0x147   :  { %v360_v55 = vadd.f32 %v358_v54, %v308_v47 }
 0x149   :  { %v147_v40 = vpop.f32.mrf.mxu0 }
 0x14a   :  { %v846_v58 = vpop.eup %845  ;;  %v418_v41 = vadd.f32 %v1036_v22, %v147_v40 }
 0x14b   :  { %v797_v59 = vpack.c.bf16 %v846_v58, %v844_v49  ;;  %v349_v60 = vmul.f32 0.0, %v846_v58  ;;  %v344_v61 = vpack.c.bf16 %v846_v58, %v846_v58 }
 0x14d   :  { %829 = vst [vmem:[%s1149_s5 + $0x8] sm:$0xff] %v797_v59   ;;  %v353_v62 = vadd.f32 %v349_v60, %v299_v52  ;;  %v359_v63 = vmul.f32 %v846_v58, %v349_v60  ;;  %v372_v1 = vunpack.c.l.b16 %v344_v61  ;;  %v776_v61 = vld [vmem:[%s1146_s0 + $0x28] sm:$0xff] }
 0x14e   :  { %721 = vmatmul.msk.bf16.gmra.mxu0 %vm96_vm0, %v776_v61 }
 0x14f   :  { %v361_v2 = vadd.f32 %v359_v63, %v309_v56  ;;  %v373_v3 = vpack.c.b16 %v372_v1, %v371_v0 }
 0x151   :  { %383 = vmatmul.bf16.vlgmr.msrb.gmra.mxu3 %v373_v3 }
 0x1d4   :  { %v384_v11 = vpop.f32.mrf.mxu3 }
 0x1d5   :  { %v389_v12 = vadd.f32 %v384_v11, %v367_v10 }
 0x1d7   :  { %847 = vtanh.f32 %v389_v12 }
 0x1dc   :  { %v386_v15 = vpop.f32.mrf.mxu3 }
 0x1dd   :  { %v848_v16 = vpop.eup %847  ;;  %v390_v18 = vadd.f32 %v386_v15, %v368_v14 }
 0x1de   :  { %v398_v19 = vmul.f32 %v848_v16, %v1064_v42  ;;  %v393_v24 = vpack.c.bf16 %v848_v16, %v848_v16 }
 0x1df   :  { %849 = vtanh.f32 %v390_v18 }
 0x1e0   :  { %v402_v20 = vadd.f32 %v398_v19, %v352_v53  ;;  %v408_v21 = vmul.f32 %v848_v16, %v398_v19  ;;  %v421_v31 = vunpack.c.l.b16 %v393_v24 }
 0x1e2   :  { %v410_v23 = vadd.f32 %v408_v21, %v360_v55 }
 0x1e5   :  { %v850_v25 = vpop.eup %849 }
 0x1e6   :  { %v802_v26 = vpack.c.bf16 %v850_v25, %v848_v16  ;;  %v399_v27 = vmul.f32 0.0, %v850_v25  ;;  %v394_v28 = vpack.c.bf16 %v850_v25, %v850_v25 }
 0x1e8   :  { %830 = vst [vmem:[%s1149_s5 + $0x10] sm:$0xff] %v802_v26   ;;  %v403_v29 = vadd.f32 %v399_v27, %v353_v62  ;;  %v409_v30 = vmul.f32 %v850_v25, %v399_v27  ;;  %v422_v32 = vunpack.c.l.b16 %v394_v28  ;;  %v150_v62 = vpop.f32.mrf.mxu0 }
 0x1e9   :  { %v467_v63 = vadd.f32 %v1028_v17, %v150_v62 }
 0x1ea   :  { %v411_v33 = vadd.f32 %v409_v30, %v361_v2  ;;  %v423_v34 = vpack.c.b16 %v422_v32, %v421_v31 }
 0x1ec   :  { %433 = vmatmul.bf16.vlgmr.msrb.gmra.mxu1 %v423_v34 }
 0x1f0   :  { %v152_v2 = vpop.f32.mrf.mxu0 }
 0x1f1   :  { %v468_v3 = vadd.f32 %v1036_v22, %v152_v2 }
 0x1f8   :  { %v155_v28 = vpop.f32.mrf.mxu0 }
 0x200   :  { %v157_v32 = vpop.f32.mrf.mxu0 }
 0x269   :  { %v434_v38 = vpop.f32.mrf.mxu1 }
 0x26a   :  { %v439_v39 = vadd.f32 %v434_v38, %v417_v37 }
 0x26c   :  { %851 = vtanh.f32 %v439_v39 }
 0x271   :  { %v436_v43 = vpop.f32.mrf.mxu1 }
 0x272   :  { %v852_v44 = vpop.eup %851  ;;  %v440_v45 = vadd.f32 %v436_v43, %v418_v41 }
 0x273   :  { %v448_v46 = vmul.f32 %v852_v44, %v1064_v42  ;;  %v443_v50 = vpack.c.bf16 %v852_v44, %v852_v44 }
 0x274   :  { %853 = vtanh.f32 %v440_v45 }
 0x275   :  { %v452_v47 = vadd.f32 %v448_v46, %v402_v20  ;;  %v458_v48 = vmul.f32 %v852_v44, %v448_v46  ;;  %v471_v57 = vunpack.c.l.b16 %v443_v50 }
 0x277   :  { %v460_v49 = vadd.f32 %v458_v48, %v410_v23 }
 0x27a   :  { %v854_v51 = vpop.eup %853 }
 0x27b   :  { %v807_v52 = vpack.c.bf16 %v854_v51, %v852_v44  ;;  %v449_v53 = vmul.f32 0.0, %v854_v51  ;;  %v444_v54 = vpack.c.bf16 %v854_v51, %v854_v51 }
 0x27d   :  { %831 = vst [vmem:[%s1149_s5 + $0x18] sm:$0xff] %v807_v52   ;;  %v453_v55 = vadd.f32 %v449_v53, %v403_v29  ;;  %v459_v56 = vmul.f32 %v854_v51, %v449_v53  ;;  %v472_v58 = vunpack.c.l.b16 %v444_v54  ;;  %v517_v29 = vadd.f32 %v1028_v17, %v155_v28 }
 0x27e   :  { %v567_v53 = vadd.f32 %v1028_v17, %v1072_v4 }
 0x27f   :  { %v461_v59 = vadd.f32 %v459_v56, %v411_v33  ;;  %v473_v60 = vpack.c.b16 %v472_v58, %v471_v57  ;;  %v518_v33 = vadd.f32 %v1036_v22, %v157_v32  ;;  %v568_v56 = vadd.f32 %v1036_v22, %v1074_v5 }
 0x281   :  { %483 = vmatmul.bf16.vlgmr.msrb.gmra.mxu2 %v473_v60 }
 0x304   :  { %v484_v0 = vpop.f32.mrf.mxu2 }
 0x305   :  { %v489_v1 = vadd.f32 %v484_v0, %v467_v63 }
 0x307   :  { %855 = vtanh.f32 %v489_v1 }
 0x30c   :  { %v486_v6 = vpop.f32.mrf.mxu2 }
 0x30d   :  { %v856_v9 = vpop.eup %855  ;;  %v490_v10 = vadd.f32 %v486_v6, %v468_v3 }
 0x30e   :  { %v498_v11 = vmul.f32 %v856_v9, %v1064_v42  ;;  %v493_v15 = vpack.c.bf16 %v856_v9, %v856_v9 }
 0x30f   :  { %857 = vtanh.f32 %v490_v10 }
 0x310   :  { %v502_v12 = vadd.f32 %v498_v11, %v452_v47  ;;  %v508_v13 = vmul.f32 %v856_v9, %v498_v11  ;;  %v521_v24 = vunpack.c.l.b16 %v493_v15 }
 0x312   :  { %v510_v14 = vadd.f32 %v508_v13, %v460_v49  ;;  %v617_v13 = vadd.f32 %v1028_v17, %v1079_v7 }
 0x315   :  { %v858_v16 = vpop.eup %857 }
 0x316   :  { %v812_v18 = vpack.c.bf16 %v858_v16, %v856_v9  ;;  %v499_v19 = vmul.f32 0.0, %v858_v16  ;;  %v494_v20 = vpack.c.bf16 %v858_v16, %v858_v16 }
 0x318   :  { %832 = vst [vmem:[%s1149_s5 + $0x20] sm:$0xff] %v812_v18   ;;  %v503_v21 = vadd.f32 %v499_v19, %v453_v55  ;;  %v509_v23 = vmul.f32 %v858_v16, %v499_v19  ;;  %v522_v25 = vunpack.c.l.b16 %v494_v20  ;;  %v618_v16 = vadd.f32 %v1036_v22, %v1082_v8 }
 0x31a   :  { %v511_v26 = vadd.f32 %v509_v23, %v461_v59  ;;  %v523_v27 = vpack.c.b16 %v522_v25, %v521_v24 }
 0x31c   :  { %533 = vmatmul.bf16.vlgmr.msra.gmra.mxu3 %v523_v27 }
 0x39f   :  { %v534_v30 = vpop.f32.mrf.mxu3 }
 0x3a0   :  { %v539_v31 = vadd.f32 %v534_v30, %v517_v29 }
 0x3a2   :  { %859 = vtanh.f32 %v539_v31 }
 0x3a7   :  { %v536_v34 = vpop.f32.mrf.mxu3 }
 0x3a8   :  { %v860_v35 = vpop.eup %859  ;;  %v540_v36 = vadd.f32 %v536_v34, %v518_v33 }
 0x3a9   :  { %v548_v37 = vmul.f32 %v860_v35, %v1064_v42  ;;  %v543_v41 = vpack.c.bf16 %v860_v35, %v860_v35 }
 0x3aa   :  { %861 = vtanh.f32 %v540_v36 }
 0x3ab   :  { %v552_v38 = vadd.f32 %v548_v37, %v502_v12  ;;  %v558_v39 = vmul.f32 %v860_v35, %v548_v37  ;;  %v571_v49 = vunpack.c.l.b16 %v543_v41 }
 0x3ad   :  { %v560_v40 = vadd.f32 %v558_v39, %v510_v14 }
 0x3b0   :  { %v862_v43 = vpop.eup %861 }
 0x3b1   :  { %v817_v44 = vpack.c.bf16 %v862_v43, %v860_v35  ;;  %v549_v45 = vmul.f32 0.0, %v862_v43  ;;  %v544_v46 = vpack.c.bf16 %v862_v43, %v862_v43 }
 0x3b3   :  { %833 = vst [vmem:[%s1149_s5 + $0x28] sm:$0xff] %v817_v44   ;;  %v553_v47 = vadd.f32 %v549_v45, %v503_v21  ;;  %v559_v48 = vmul.f32 %v862_v43, %v549_v45  ;;  %v572_v50 = vunpack.c.l.b16 %v544_v46 }
 0x3b5   :  { %v561_v51 = vadd.f32 %v559_v48, %v511_v26  ;;  %v573_v52 = vpack.c.b16 %v572_v50, %v571_v49 }
 0x3b7   :  { %583 = vmatmul.bf16.vlgmr.msra.gmra.mxu1 %v573_v52 }
 0x434   :  { %v584_v54 = vpop.f32.mrf.mxu1 }
 0x435   :  { %v589_v55 = vadd.f32 %v584_v54, %v567_v53 }
 0x437   :  { %863 = vtanh.f32 %v589_v55 }
 0x43c   :  { %v586_v57 = vpop.f32.mrf.mxu1 }
 0x43d   :  { %v864_v58 = vpop.eup %863  ;;  %v590_v59 = vadd.f32 %v586_v57, %v568_v56 }
 0x43e   :  { %v598_v60 = vmul.f32 %v864_v58, %v1064_v42  ;;  %v593_v0 = vpack.c.bf16 %v864_v58, %v864_v58 }
 0x43f   :  { %865 = vtanh.f32 %v590_v59 }
 0x440   :  { %v602_v61 = vadd.f32 %v598_v60, %v552_v38  ;;  %v608_v62 = vmul.f32 %v864_v58, %v598_v60  ;;  %v621_v9 = vunpack.c.l.b16 %v593_v0 }
 0x442   :  { %v610_v63 = vadd.f32 %v608_v62, %v560_v40 }
 0x445   :  { %v866_v1 = vpop.eup %865 }
 0x446   :  { %v822_v2 = vpack.c.bf16 %v866_v1, %v864_v58  ;;  %v599_v3 = vmul.f32 0.0, %v866_v1  ;;  %v594_v4 = vpack.c.bf16 %v866_v1, %v866_v1 }
 0x448   :  { %834 = vst [vmem:[%s1149_s5 + $0x30] sm:$0xff] %v822_v2   ;;  %v603_v6 = vadd.f32 %v599_v3, %v553_v47  ;;  %v609_v5 = vmul.f32 %v866_v1, %v599_v3  ;;  %v622_v10 = vunpack.c.l.b16 %v594_v4 }
 0x44a   :  { %v611_v11 = vadd.f32 %v609_v5, %v561_v51  ;;  %v623_v12 = vpack.c.b16 %v622_v10, %v621_v9 }
 0x44c   :  { %633 = vmatmul.bf16.vlgmr.msra.gmra.mxu2 %v623_v12 }
 0x4cf   :  { %v634_v14 = vpop.f32.mrf.mxu2 }
 0x4d0   :  { %v639_v15 = vadd.f32 %v634_v14, %v617_v13 }
 0x4d2   :  { %867 = vtanh.f32 %v639_v15 }
 0x4d7   :  { %v636_v18 = vpop.f32.mrf.mxu2 }
 0x4d8   :  { %v868_v19 = vpop.eup %867  ;;  %v640_v20 = vadd.f32 %v636_v18, %v618_v16 }
 0x4d9   :  { %v648_v21 = vmul.f32 %v868_v19, %v1064_v42 }
 0x4da   :  { %869 = vtanh.f32 %v640_v20 }
 0x4db   :  { %v652_v23 = vadd.f32 %v648_v21, %v602_v61  ;;  %v658_v24 = vmul.f32 %v868_v19, %v648_v21 }
 0x4dd   :  { %654 = vst [vmem:[%s1150_s6] sm:$0xff] %v652_v23  ;;  %v660_v25 = vadd.f32 %v658_v24, %v610_v63 }
 0x4df   :  { %662 = vst [vmem:[%s1151_s7] sm:$0xff] %v660_v25 }
 0x4e0   :  { %v870_v17 = vpop.eup %869 }
 0x4e1   :  { %v827_v7 = vpack.c.bf16 %v870_v17, %v868_v19  ;;  %v649_v22 = vmul.f32 0.0, %v870_v17 }
 0x4e3   :  { %835 = vst [vmem:[%s1149_s5 + $0x38] sm:$0xff] %v827_v7   ;;  %v653_v42 = vadd.f32 %v649_v22, %v603_v6  ;;  %v659_v8 = vmul.f32 %v870_v17, %v649_v22 }
 0x4e5   :  { %655 = vst [vmem:[%s1150_s6 + $0x8] sm:$0xff] %v653_v42  ;;  %v661_v26 = vadd.f32 %v659_v8, %v611_v11 }
 0x4e7   :  { %663 = vst [vmem:[%s1151_s7 + $0x8] sm:$0xff] %v661_v26 }

</bundles_post_ra>
